<compile_context>
chip_gen: v7x
topology: tpu7x:2x2x1
jax: 0.10.0
libtpu: 0.0.40
codegen_flags: <defaults>
</compile_context>

<pallas_src>
import jax
import jax.numpy as jnp
from jax import lax
from jax.experimental import pallas as pl
from jax.experimental.pallas import tpu as pltpu

B_TILE = 4  # images per grid step (matmul M-batching factor)


# ----------------------------------------------------------------------------
# Fused forward kernel: one grid step == B_TILE images.
# Row layout: images stacked along rows with per-image stride 32 (input),
# 16 (pooled conv1), 8 (pooled conv2).  Column layouts:
#   input        : ci*32 + w                (96 real cols, padded to 128)
#   conv outputs : parity*128 + co*Wp + wp  (horizontal pool = max of halves)
#   pooled conv  : co*Wp + wp               (84 / 80 real cols, padded to 128)
# ----------------------------------------------------------------------------
def _lenet_kernel(x_ref, g1_ref, b1_ref, g2_ref, b2_ref,
                  w1_ref, fb1_ref, w2_ref, fb2_ref, w3_ref, fb3_ref,
                  out_ref, hp1_s, y1_s, hp2_s, y2_s):
    f32, bf16 = jnp.float32, jnp.bfloat16
    bt = x_ref.shape[0]                              # images in this grid step

    # ---- stage 1: conv1 (3->6, 5x5, valid) + ReLU + 2x2 max-pool ------------
    x_all = x_ref[...].reshape(bt * 32, 128)         # (128, 128) f32
    m1 = (bt - 1) * 32 + 28                          # 124 conv1 output rows
    # K-fused im2col strip: lane-concat the 5 shifted vertical-tap windows.
    strip1 = jnp.concatenate(
        [x_all[i:i + m1, :].astype(bf16) for i in range(5)], axis=1)
    z1 = jnp.dot(strip1, g1_ref[...], preferred_element_type=f32)  # (124, 256)
    # horizontal 2x pool: max over the two column-parity halves
    hp1_s[pl.ds(0, m1), :] = jnp.maximum(z1[:, 0:128], z1[:, 128:256])
    # vertical 2x pool: stride-2 sublane reads (even / odd rows) + max
    p1 = m1 // 2                                     # 62 pooled rows (stride 16/img)
    v1 = jnp.maximum(hp1_s[pl.ds(0, p1, stride=2), :],
                     hp1_s[pl.ds(1, p1, stride=2), :])
    y1_s[pl.ds(0, p1), :] = jnp.maximum(v1 + b1_ref[...], 0.0)

    # ---- stage 2: conv2 (6->16, 5x5, valid) + ReLU + 2x2 max-pool -----------
    m2 = (bt - 1) * 16 + 10                          # 58 conv2 output rows
    strip2 = jnp.concatenate(
        [y1_s[pl.ds(i, m2), :].astype(bf16) for i in range(5)], axis=1)
    z2 = jnp.dot(strip2, g2_ref[...], preferred_element_type=f32)  # (58, 256)
    hp2_s[pl.ds(0, m2), :] = jnp.maximum(z2[:, 0:128], z2[:, 128:256])
    p2 = m2 // 2                                     # 29 pooled rows (stride 8/img)
    v2 = jnp.maximum(hp2_s[pl.ds(0, p2, stride=2), :],
                     hp2_s[pl.ds(1, p2, stride=2), :])
    y2_s[pl.ds(0, p2), :] = jnp.maximum(v2 + b2_ref[...], 0.0)

    # ---- fc1 -> fc2 -> fc3 (the .view(-1,400) flatten is folded into w1) ----
    # fc1 LHS row = one image: gather its 5 pooled rows via stride-8 reads.
    lhs1 = jnp.concatenate(
        [y2_s[pl.ds(hp, bt, stride=8), :].astype(bf16) for hp in range(5)],
        axis=1)                                      # (bt, 640)
    a1 = jnp.dot(lhs1, w1_ref[...], preferred_element_type=f32)
    a1 = jnp.maximum(a1 + fb1_ref[...], 0.0)         # (bt, 128)
    a2 = jnp.dot(a1.astype(bf16), w2_ref[...], preferred_element_type=f32)
    a2 = jnp.maximum(a2 + fb2_ref[...], 0.0)         # (bt, 128)
    out = jnp.dot(a2.astype(bf16), w3_ref[...], preferred_element_type=f32)
    out_ref[...] = (out + fb3_ref[...]).astype(out_ref.dtype)   # lane-dense store


# ----------------------------------------------------------------------------
# One-time (init) weight re-layout.
# ----------------------------------------------------------------------------
def _conv_tap_matrices(wt, w_in):
    """Returns (kh, cin*w_in, 256): column p*128 + co*Wp + wp holds
    wt[co, ci, i, j] for input column ci*w_in + (2*wp + p + j)."""
    cout, cin, kh, kw = wt.shape
    wo = w_in - kw + 1
    wp_n = wo // 2
    cols = cout * wp_n
    w_idx = jnp.arange(w_in)[:, None]                 # (w_in, 1)
    wp_idx = jnp.arange(wp_n)[None, :]                # (1, wp_n)
    taps = []
    for i in range(kh):
        per_parity = []
        for p in (0, 1):
            j = w_idx - (2 * wp_idx + p)              # (w_in, wp_n)
            valid = (j >= 0) & (j < kw)
            j_c = jnp.clip(j, 0, kw - 1)
            g = wt[:, :, i, :][:, :, j_c]             # (cout, cin, w_in, wp_n)
            g = jnp.where(valid[None, None], g, 0.0)
            g = g.transpose(1, 2, 0, 3).reshape(cin * w_in, cols)
            per_parity.append(jnp.pad(g, ((0, 0), (0, 128 - cols))))
        taps.append(jnp.concatenate(per_parity, axis=1))   # (cin*w_in, 256)
    return jnp.stack(taps, axis=0)


def prepare_params(params):
    f32, bf16 = jnp.float32, jnp.bfloat16
    # conv1: per-tap (5, 96, 256) -> pad input cols to 128 -> K-fused (640, 256)
    g1 = _conv_tap_matrices(params["conv1_w"].astype(f32), 32)
    g1 = jnp.pad(g1, ((0, 0), (0, 128 - g1.shape[1]), (0, 0))).reshape(640, 256)
    # conv2: per-tap (5, 84, 256) -> pad -> (640, 256)
    g2 = _conv_tap_matrices(params["conv2_w"].astype(f32), 14)
    g2 = jnp.pad(g2, ((0, 0), (0, 128 - g2.shape[1]), (0, 0))).reshape(640, 256)
    b1v = jnp.pad(jnp.repeat(params["conv1_b"], 14), (0, 128 - 84)).reshape(1, 128)
    b2v = jnp.pad(jnp.repeat(params["conv2_b"], 5), (0, 128 - 80)).reshape(1, 128)
    # fc1: fold the NCHW flatten (f = co*25 + hp*5 + wp); row = hp*128 + co*5+wp
    w1 = params["fc1_w"].reshape(120, 16, 5, 5).transpose(2, 1, 3, 0)
    w1 = w1.reshape(5, 80, 120)
    w1 = jnp.pad(w1, ((0, 0), (0, 128 - 80), (0, 128 - 120))).reshape(640, 128)
    fb1 = jnp.pad(params["fc1_b"], (0, 128 - 120)).reshape(1, 128)
    w2 = jnp.pad(params["fc2_w"].T, ((0, 128 - 120), (0, 128 - 84)))
    fb2 = jnp.pad(params["fc2_b"], (0, 128 - 84)).reshape(1, 128)
    w3 = jnp.pad(params["fc3_w"].T, ((0, 128 - 84), (0, 128 - 10)))
    fb3 = jnp.pad(params["fc3_b"], (0, 128 - 10)).reshape(1, 128)
    return {
        "g1": g1.astype(bf16), "b1v": b1v.astype(f32),
        "g2": g2.astype(bf16), "b2v": b2v.astype(f32),
        "w1": w1.astype(bf16), "fb1": fb1.astype(f32),
        "w2": w2.astype(bf16), "fb2": fb2.astype(f32),
        "w3": w3.astype(bf16), "fb3": fb3.astype(f32),
    }


# ----------------------------------------------------------------------------
# Forward pass: ONE pallas_call, batch-parallel grid of B_TILE-image steps.
# ----------------------------------------------------------------------------
def _full_spec(shape):
    return pl.BlockSpec(shape, lambda i: (0,) * len(shape))


@jax.jit
def net_forward(prep, x):
    B = x.shape[0]
    assert x.shape[1:] == (3, 32, 32), x.shape
    # layout plumbing: rows = image row h, cols = ci*32 + w, pad to 128 lanes
    x1 = x.astype(jnp.float32).transpose(0, 2, 1, 3).reshape(B, 32, 96)
    x1 = jnp.pad(x1, ((0, 0), (0, 0), (0, 128 - 96)))
    pad_b = (-B) % B_TILE
    if pad_b:
        x1 = jnp.pad(x1, ((0, pad_b), (0, 0), (0, 0)))
    g = x1.shape[0] // B_TILE

    out = pl.pallas_call(
        _lenet_kernel,
        out_shape=jax.ShapeDtypeStruct((g, B_TILE, 128), jnp.float32),
        grid_spec=pltpu.PrefetchScalarGridSpec(
            num_scalar_prefetch=0,
            grid=(g,),
            in_specs=[
                pl.BlockSpec((B_TILE, 32, 128), lambda i: (i, 0, 0)),  # x tile
                _full_spec((640, 256)),   # g1  (bf16, K-fused conv1 weights)
                _full_spec((1, 128)),     # b1
                _full_spec((640, 256)),   # g2  (bf16, K-fused conv2 weights)
                _full_spec((1, 128)),     # b2
                _full_spec((640, 128)),   # w1  (bf16, flatten folded in)
                _full_spec((1, 128)),     # fb1
                _full_spec((128, 128)),   # w2  (bf16)
                _full_spec((1, 128)),     # fb2
                _full_spec((128, 128)),   # w3  (bf16, lane-dense padded)
                _full_spec((1, 128)),     # fb3
            ],
            out_specs=pl.BlockSpec((None, B_TILE, 128), lambda i: (i, 0, 0)),
            scratch_shapes=[
                pltpu.VMEM((B_TILE * 32, 128), jnp.float32),  # pre-pool conv1
                pltpu.VMEM((B_TILE * 16, 128), jnp.float32),  # pooled conv1
                pltpu.VMEM((B_TILE * 16, 128), jnp.float32),  # pre-pool conv2
                pltpu.VMEM((B_TILE * 8, 128), jnp.float32),   # pooled conv2
            ],
        ),
        compiler_params=pltpu.CompilerParams(
            dimension_semantics=("parallel",)),
    )(x1, prep["g1"], prep["b1v"], prep["g2"], prep["b2v"],
      prep["w1"], prep["fb1"], prep["w2"], prep["fb2"],
      prep["w3"], prep["fb3"])
    return out.reshape(g * B_TILE, 128)[:B, :10]


# ----------------------------------------------------------------------------
# Parameter init (PyTorch-default-style uniform(+-1/sqrt(fan_in)))
# ----------------------------------------------------------------------------
def init_params(key):
    def uni(k, shape, fan_in):
        bound = 1.0 / jnp.sqrt(fan_in)
        return jax.random.uniform(k, shape, jnp.float32, -bound, bound)

    ks = jax.random.split(key, 10)
    return {
        "conv1_w": uni(ks[0], (6, 3, 5, 5), 3 * 5 * 5),
        "conv1_b": uni(ks[1], (6,), 3 * 5 * 5),
        "conv2_w": uni(ks[2], (16, 6, 5, 5), 6 * 5 * 5),
        "conv2_b": uni(ks[3], (16,), 6 * 5 * 5),
        "fc1_w": uni(ks[4], (120, 400), 400),
        "fc1_b": uni(ks[5], (120,), 400),
        "fc2_w": uni(ks[6], (84, 120), 120),
        "fc2_b": uni(ks[7], (84,), 120),
        "fc3_w": uni(ks[8], (10, 84), 84),
        "fc3_b": uni(ks[9], (10,), 84),
    }


# ----------------------------------------------------------------------------
# Pure-JAX f32 reference (structural correctness check)
# ----------------------------------------------------------------------------
def reference_forward(params, x):
    def pool(a):
        B, C, H, W = a.shape
        return a.reshape(B, C, H // 2, 2, W // 2, 2).max(axis=(3, 5))

    y = lax.conv_general_dilated(x, params["conv1_w"], (1, 1), "VALID",
                                 dimension_numbers=("NCHW", "OIHW", "NCHW"))
    y = pool(jnp.maximum(y + params["conv1_b"][None, :, None, None], 0.0))
    y = lax.conv_general_dilated(y, params["conv2_w"], (1, 1), "VALID",
                                 dimension_numbers=("NCHW", "OIHW", "NCHW"))
    y = pool(jnp.maximum(y + params["conv2_b"][None, :, None, None], 0.0))
    y = y.reshape(y.shape[0], 16 * 5 * 5)
    y = jnp.maximum(y @ params["fc1_w"].T + params["fc1_b"], 0.0)
    y = jnp.maximum(y @ params["fc2_w"].T + params["fc2_b"], 0.0)
    return y @ params["fc3_w"].T + params["fc3_b"]


if __name__ == "__main__":
    key = jax.random.PRNGKey(0)
    k_params, k_input = jax.random.split(key)
    params = init_params(k_params)
    prep = prepare_params(params)             # one-time weight re-layout

    # Net implies 32x32 RGB inputs (CIFAR-10); B=8 -> 2 even grid steps.
    B = 8
    x = jax.random.normal(k_input, (B, 3, 32, 32), dtype=jnp.float32)

    out = jax.block_until_ready(net_forward(prep, x))
    assert out.shape == (B, 10), out.shape
    assert bool(jnp.all(jnp.isfinite(out)))

    ref = jax.block_until_ready(reference_forward(params, x))
    err = float(jnp.max(jnp.abs(out - ref)))
    # Tolerance re-derived for bf16 MXU operands (f32 accumulation): expected
    # max abs logit error ~1e-2; 5e-2 gives headroom while still catching
    # layout/reindexing bugs (which produce O(1) errors).
    assert err < 5e-2, f"kernel/reference mismatch: max abs err = {err}"

    print("KERNEL_OK")
</pallas_src>

<mosaic_0001>
module attributes {stable_mosaic.version = 11 : i64} {
  func.func @_lenet_kernel(%arg0: i32, %arg1: memref<4x32x128xf32, #tpu.memory_space<vmem>>, %arg2: memref<640x256xbf16, #tpu.memory_space<vmem>>, %arg3: memref<1x128xf32, #tpu.memory_space<vmem>>, %arg4: memref<640x256xbf16, #tpu.memory_space<vmem>>, %arg5: memref<1x128xf32, #tpu.memory_space<vmem>>, %arg6: memref<640x128xbf16, #tpu.memory_space<vmem>>, %arg7: memref<1x128xf32, #tpu.memory_space<vmem>>, %arg8: memref<128x128xbf16, #tpu.memory_space<vmem>>, %arg9: memref<1x128xf32, #tpu.memory_space<vmem>>, %arg10: memref<128x128xbf16, #tpu.memory_space<vmem>>, %arg11: memref<1x128xf32, #tpu.memory_space<vmem>>, %arg12: memref<1x4x128xf32, #tpu.memory_space<vmem>>, %arg13: memref<128x128xf32, #tpu.memory_space<vmem>>, %arg14: memref<64x128xf32, #tpu.memory_space<vmem>>, %arg15: memref<64x128xf32, #tpu.memory_space<vmem>>, %arg16: memref<32x128xf32, #tpu.memory_space<vmem>>) attributes {dimension_semantics = [#tpu.dimension_semantics<parallel>], iteration_bounds = array<i64: 2>, scalar_prefetch = 0 : i64, scratch_operands = 4 : i64, tpu.core_type = #tpu.core_type<tc>, window_params = [{transform_indices = @transform_0, window_bounds = array<i64: 4, 32, 128>}, {pipeline_mode = #tpu.pipeline_mode<synchronous>, transform_indices = @transform_1, window_bounds = array<i64: 640, 256>}, {pipeline_mode = #tpu.pipeline_mode<synchronous>, transform_indices = @transform_2, window_bounds = array<i64: 1, 128>}, {pipeline_mode = #tpu.pipeline_mode<synchronous>, transform_indices = @transform_3, window_bounds = array<i64: 640, 256>}, {pipeline_mode = #tpu.pipeline_mode<synchronous>, transform_indices = @transform_4, window_bounds = array<i64: 1, 128>}, {pipeline_mode = #tpu.pipeline_mode<synchronous>, transform_indices = @transform_5, window_bounds = array<i64: 640, 128>}, {pipeline_mode = #tpu.pipeline_mode<synchronous>, transform_indices = @transform_6, window_bounds = array<i64: 1, 128>}, {pipeline_mode = #tpu.pipeline_mode<synchronous>, transform_indices = @transform_7, window_bounds = array<i64: 128, 128>}, {pipeline_mode = #tpu.pipeline_mode<synchronous>, transform_indices = @transform_8, window_bounds = array<i64: 1, 128>}, {pipeline_mode = #tpu.pipeline_mode<synchronous>, transform_indices = @transform_9, window_bounds = array<i64: 128, 128>}, {pipeline_mode = #tpu.pipeline_mode<synchronous>, transform_indices = @transform_10, window_bounds = array<i64: 1, 128>}, {transform_indices = @transform_11, window_bounds = array<i64: 1, 4, 128>}]} {
    %c0 = arith.constant 0 : index
    %c0_0 = arith.constant 0 : index
    %c0_1 = arith.constant 0 : index
    %0 = vector.load %arg1[%c0, %c0_0, %c0_1] : memref<4x32x128xf32, #tpu.memory_space<vmem>>, vector<4x32x128xf32>
    %1 = vector.shape_cast %0 : vector<4x32x128xf32> to vector<128x128xf32>
    %2 = vector.extract_strided_slice %1 {offsets = [0, 0], sizes = [124, 128], strides = [1, 1]} : vector<128x128xf32> to vector<124x128xf32>
    %3 = arith.truncf %2 : vector<124x128xf32> to vector<124x128xbf16>
    %4 = vector.extract_strided_slice %1 {offsets = [1, 0], sizes = [124, 128], strides = [1, 1]} : vector<128x128xf32> to vector<124x128xf32>
    %5 = arith.truncf %4 : vector<124x128xf32> to vector<124x128xbf16>
    %6 = vector.extract_strided_slice %1 {offsets = [2, 0], sizes = [124, 128], strides = [1, 1]} : vector<128x128xf32> to vector<124x128xf32>
    %7 = arith.truncf %6 : vector<124x128xf32> to vector<124x128xbf16>
    %8 = vector.extract_strided_slice %1 {offsets = [3, 0], sizes = [124, 128], strides = [1, 1]} : vector<128x128xf32> to vector<124x128xf32>
    %9 = arith.truncf %8 : vector<124x128xf32> to vector<124x128xbf16>
    %10 = vector.extract_strided_slice %1 {offsets = [4, 0], sizes = [124, 128], strides = [1, 1]} : vector<128x128xf32> to vector<124x128xf32>
    %11 = arith.truncf %10 : vector<124x128xf32> to vector<124x128xbf16>
    %12 = tpu.concatenate %3, %5, %7, %9, %11 in 1 : vector<124x128xbf16>, vector<124x128xbf16>, vector<124x128xbf16>, vector<124x128xbf16>, vector<124x128xbf16> -> vector<124x640xbf16>
    %c0_2 = arith.constant 0 : index
    %c0_3 = arith.constant 0 : index
    %13 = vector.load %arg2[%c0_2, %c0_3] : memref<640x256xbf16, #tpu.memory_space<vmem>>, vector<640x256xbf16>
    %cst = arith.constant dense<0.000000e+00> : vector<124x256xf32>
    %14 = tpu.matmul %12, %13, %cst {dimension_numbers = #tpu.dot_dimension_numbers<[1], [0], [0], [1], [0, 0, 1, 1], [], []>} : vector<124x640xbf16>, vector<640x256xbf16>, vector<124x256xf32> -> vector<124x256xf32>
    %15 = vector.extract_strided_slice %14 {offsets = [0, 0], sizes = [124, 128], strides = [1, 1]} : vector<124x256xf32> to vector<124x128xf32>
    %16 = vector.extract_strided_slice %14 {offsets = [0, 128], sizes = [124, 128], strides = [1, 1]} : vector<124x256xf32> to vector<124x128xf32>
    %17 = arith.maximumf %15, %16 : vector<124x128xf32>
    %c0_4 = arith.constant 0 : index
    %c0_5 = arith.constant 0 : index
    %18 = vector.load %arg13[%c0_4, %c0_5] : memref<128x128xf32, #tpu.memory_space<vmem>>, vector<124x128xf32>
    tpu.vector_store %arg13[%c0_4, %c0_5], %17 {strides = array<i32>} : memref<128x128xf32, #tpu.memory_space<vmem>>, vector<124x128xf32>,
    %c0_6 = arith.constant 0 : index
    %c0_7 = arith.constant 0 : index
    %19 = tpu.strided_load %arg13[%c0_6, %c0_7] {strides = array<i32: 2, 1>} : memref<128x128xf32, #tpu.memory_space<vmem>>, vector<62x128xf32>
    %c1 = arith.constant 1 : index
    %c0_8 = arith.constant 0 : index
    %20 = tpu.strided_load %arg13[%c1, %c0_8] {strides = array<i32: 2, 1>} : memref<128x128xf32, #tpu.memory_space<vmem>>, vector<62x128xf32>
    %21 = arith.maximumf %19, %20 : vector<62x128xf32>
    %c0_9 = arith.constant 0 : index
    %c0_10 = arith.constant 0 : index
    %22 = vector.load %arg3[%c0_9, %c0_10] : memref<1x128xf32, #tpu.memory_space<vmem>>, vector<1x128xf32>
    %23 = vector.broadcast %22 : vector<1x128xf32> to vector<62x128xf32>
    %24 = arith.addf %21, %23 : vector<62x128xf32>
    %cst_11 = arith.constant 0.000000e+00 : f32
    %25 = vector.broadcast %cst_11 : f32 to vector<62x128xf32>
    %26 = arith.maximumf %24, %25 : vector<62x128xf32>
    %c0_12 = arith.constant 0 : index
    %c0_13 = arith.constant 0 : index
    %27 = vector.load %arg14[%c0_12, %c0_13] : memref<64x128xf32, #tpu.memory_space<vmem>>, vector<62x128xf32>
    tpu.vector_store %arg14[%c0_12, %c0_13], %26 {strides = array<i32>} : memref<64x128xf32, #tpu.memory_space<vmem>>, vector<62x128xf32>,
    %c0_14 = arith.constant 0 : index
    %c0_15 = arith.constant 0 : index
    %28 = vector.load %arg14[%c0_14, %c0_15] : memref<64x128xf32, #tpu.memory_space<vmem>>, vector<58x128xf32>
    %29 = arith.truncf %28 : vector<58x128xf32> to vector<58x128xbf16>
    %c1_16 = arith.constant 1 : index
    %c0_17 = arith.constant 0 : index
    %30 = vector.load %arg14[%c1_16, %c0_17] : memref<64x128xf32, #tpu.memory_space<vmem>>, vector<58x128xf32>
    %31 = arith.truncf %30 : vector<58x128xf32> to vector<58x128xbf16>
    %c2 = arith.constant 2 : index
    %c0_18 = arith.constant 0 : index
    %32 = vector.load %arg14[%c2, %c0_18] : memref<64x128xf32, #tpu.memory_space<vmem>>, vector<58x128xf32>
    %33 = arith.truncf %32 : vector<58x128xf32> to vector<58x128xbf16>
    %c3 = arith.constant 3 : index
    %c0_19 = arith.constant 0 : index
    %34 = vector.load %arg14[%c3, %c0_19] : memref<64x128xf32, #tpu.memory_space<vmem>>, vector<58x128xf32>
    %35 = arith.truncf %34 : vector<58x128xf32> to vector<58x128xbf16>
    %c4 = arith.constant 4 : index
    %c0_20 = arith.constant 0 : index
    %36 = vector.load %arg14[%c4, %c0_20] : memref<64x128xf32, #tpu.memory_space<vmem>>, vector<58x128xf32>
    %37 = arith.truncf %36 : vector<58x128xf32> to vector<58x128xbf16>
    %38 = tpu.concatenate %29, %31, %33, %35, %37 in 1 : vector<58x128xbf16>, vector<58x128xbf16>, vector<58x128xbf16>, vector<58x128xbf16>, vector<58x128xbf16> -> vector<58x640xbf16>
    %c0_21 = arith.constant 0 : index
    %c0_22 = arith.constant 0 : index
    %39 = vector.load %arg4[%c0_21, %c0_22] : memref<640x256xbf16, #tpu.memory_space<vmem>>, vector<640x256xbf16>
    %cst_23 = arith.constant dense<0.000000e+00> : vector<58x256xf32>
    %40 = tpu.matmul %38, %39, %cst_23 {dimension_numbers = #tpu.dot_dimension_numbers<[1], [0], [0], [1], [0, 0, 1, 1], [], []>} : vector<58x640xbf16>, vector<640x256xbf16>, vector<58x256xf32> -> vector<58x256xf32>
    %41 = vector.extract_strided_slice %40 {offsets = [0, 0], sizes = [58, 128], strides = [1, 1]} : vector<58x256xf32> to vector<58x128xf32>
    %42 = vector.extract_strided_slice %40 {offsets = [0, 128], sizes = [58, 128], strides = [1, 1]} : vector<58x256xf32> to vector<58x128xf32>
    %43 = arith.maximumf %41, %42 : vector<58x128xf32>
    %c0_24 = arith.constant 0 : index
    %c0_25 = arith.constant 0 : index
    %44 = vector.load %arg15[%c0_24, %c0_25] : memref<64x128xf32, #tpu.memory_space<vmem>>, vector<58x128xf32>
    tpu.vector_store %arg15[%c0_24, %c0_25], %43 {strides = array<i32>} : memref<64x128xf32, #tpu.memory_space<vmem>>, vector<58x128xf32>,
    %c0_26 = arith.constant 0 : index
    %c0_27 = arith.constant 0 : index
    %45 = tpu.strided_load %arg15[%c0_26, %c0_27] {strides = array<i32: 2, 1>} : memref<64x128xf32, #tpu.memory_space<vmem>>, vector<29x128xf32>
    %c1_28 = arith.constant 1 : index
    %c0_29 = arith.constant 0 : index
    %46 = tpu.strided_load %arg15[%c1_28, %c0_29] {strides = array<i32: 2, 1>} : memref<64x128xf32, #tpu.memory_space<vmem>>, vector<29x128xf32>
    %47 = arith.maximumf %45, %46 : vector<29x128xf32>
    %c0_30 = arith.constant 0 : index
    %c0_31 = arith.constant 0 : index
    %48 = vector.load %arg5[%c0_30, %c0_31] : memref<1x128xf32, #tpu.memory_space<vmem>>, vector<1x128xf32>
    %49 = vector.broadcast %48 : vector<1x128xf32> to vector<29x128xf32>
    %50 = arith.addf %47, %49 : vector<29x128xf32>
    %cst_32 = arith.constant 0.000000e+00 : f32
    %51 = vector.broadcast %cst_32 : f32 to vector<29x128xf32>
    %52 = arith.maximumf %50, %51 : vector<29x128xf32>
    %c0_33 = arith.constant 0 : index
    %c0_34 = arith.constant 0 : index
    %53 = vector.load %arg16[%c0_33, %c0_34] : memref<32x128xf32, #tpu.memory_space<vmem>>, vector<29x128xf32>
    tpu.vector_store %arg16[%c0_33, %c0_34], %52 {strides = array<i32>} : memref<32x128xf32, #tpu.memory_space<vmem>>, vector<29x128xf32>,
    %c0_35 = arith.constant 0 : index
    %c0_36 = arith.constant 0 : index
    %54 = tpu.strided_load %arg16[%c0_35, %c0_36] {strides = array<i32: 8, 1>} : memref<32x128xf32, #tpu.memory_space<vmem>>, vector<4x128xf32>
    %55 = arith.truncf %54 : vector<4x128xf32> to vector<4x128xbf16>
    %c1_37 = arith.constant 1 : index
    %c0_38 = arith.constant 0 : index
    %56 = tpu.strided_load %arg16[%c1_37, %c0_38] {strides = array<i32: 8, 1>} : memref<32x128xf32, #tpu.memory_space<vmem>>, vector<4x128xf32>
    %57 = arith.truncf %56 : vector<4x128xf32> to vector<4x128xbf16>
    %c2_39 = arith.constant 2 : index
    %c0_40 = arith.constant 0 : index
    %58 = tpu.strided_load %arg16[%c2_39, %c0_40] {strides = array<i32: 8, 1>} : memref<32x128xf32, #tpu.memory_space<vmem>>, vector<4x128xf32>
    %59 = arith.truncf %58 : vector<4x128xf32> to vector<4x128xbf16>
    %c3_41 = arith.constant 3 : index
    %c0_42 = arith.constant 0 : index
    %60 = tpu.strided_load %arg16[%c3_41, %c0_42] {strides = array<i32: 8, 1>} : memref<32x128xf32, #tpu.memory_space<vmem>>, vector<4x128xf32>
    %61 = arith.truncf %60 : vector<4x128xf32> to vector<4x128xbf16>
    %c4_43 = arith.constant 4 : index
    %c0_44 = arith.constant 0 : index
    %62 = tpu.strided_load %arg16[%c4_43, %c0_44] {strides = array<i32: 8, 1>} : memref<32x128xf32, #tpu.memory_space<vmem>>, vector<4x128xf32>
    %63 = arith.truncf %62 : vector<4x128xf32> to vector<4x128xbf16>
    %64 = tpu.concatenate %55, %57, %59, %61, %63 in 1 : vector<4x128xbf16>, vector<4x128xbf16>, vector<4x128xbf16>, vector<4x128xbf16>, vector<4x128xbf16> -> vector<4x640xbf16>
    %c0_45 = arith.constant 0 : index
    %c0_46 = arith.constant 0 : index
    %65 = vector.load %arg6[%c0_45, %c0_46] : memref<640x128xbf16, #tpu.memory_space<vmem>>, vector<640x128xbf16>
    %cst_47 = arith.constant dense<0.000000e+00> : vector<4x128xf32>
    %66 = tpu.matmul %64, %65, %cst_47 {dimension_numbers = #tpu.dot_dimension_numbers<[1], [0], [0], [1], [0, 0, 1, 1], [], []>} : vector<4x640xbf16>, vector<640x128xbf16>, vector<4x128xf32> -> vector<4x128xf32>
    %c0_48 = arith.constant 0 : index
    %c0_49 = arith.constant 0 : index
    %67 = vector.load %arg7[%c0_48, %c0_49] : memref<1x128xf32, #tpu.memory_space<vmem>>, vector<1x128xf32>
    %68 = vector.broadcast %67 : vector<1x128xf32> to vector<4x128xf32>
    %69 = arith.addf %66, %68 : vector<4x128xf32>
    %cst_50 = arith.constant 0.000000e+00 : f32
    %70 = vector.broadcast %cst_50 : f32 to vector<4x128xf32>
    %71 = arith.maximumf %69, %70 : vector<4x128xf32>
    %72 = arith.truncf %71 : vector<4x128xf32> to vector<4x128xbf16>
    %c0_51 = arith.constant 0 : index
    %c0_52 = arith.constant 0 : index
    %73 = vector.load %arg8[%c0_51, %c0_52] : memref<128x128xbf16, #tpu.memory_space<vmem>>, vector<128x128xbf16>
    %cst_53 = arith.constant dense<0.000000e+00> : vector<4x128xf32>
    %74 = tpu.matmul %72, %73, %cst_53 {dimension_numbers = #tpu.dot_dimension_numbers<[1], [0], [0], [1], [0, 0, 1, 1], [], []>} : vector<4x128xbf16>, vector<128x128xbf16>, vector<4x128xf32> -> vector<4x128xf32>
    %c0_54 = arith.constant 0 : index
    %c0_55 = arith.constant 0 : index
    %75 = vector.load %arg9[%c0_54, %c0_55] : memref<1x128xf32, #tpu.memory_space<vmem>>, vector<1x128xf32>
    %76 = vector.broadcast %75 : vector<1x128xf32> to vector<4x128xf32>
    %77 = arith.addf %74, %76 : vector<4x128xf32>
    %cst_56 = arith.constant 0.000000e+00 : f32
    %78 = vector.broadcast %cst_56 : f32 to vector<4x128xf32>
    %79 = arith.maximumf %77, %78 : vector<4x128xf32>
    %80 = arith.truncf %79 : vector<4x128xf32> to vector<4x128xbf16>
    %c0_57 = arith.constant 0 : index
    %c0_58 = arith.constant 0 : index
    %81 = vector.load %arg10[%c0_57, %c0_58] : memref<128x128xbf16, #tpu.memory_space<vmem>>, vector<128x128xbf16>
    %cst_59 = arith.constant dense<0.000000e+00> : vector<4x128xf32>
    %82 = tpu.matmul %80, %81, %cst_59 {dimension_numbers = #tpu.dot_dimension_numbers<[1], [0], [0], [1], [0, 0, 1, 1], [], []>} : vector<4x128xbf16>, vector<128x128xbf16>, vector<4x128xf32> -> vector<4x128xf32>
    %c0_60 = arith.constant 0 : index
    %c0_61 = arith.constant 0 : index
    %83 = vector.load %arg11[%c0_60, %c0_61] : memref<1x128xf32, #tpu.memory_space<vmem>>, vector<1x128xf32>
    %84 = vector.broadcast %83 : vector<1x128xf32> to vector<4x128xf32>
    %85 = arith.addf %82, %84 : vector<4x128xf32>
    %c0_62 = arith.constant 0 : index
    %c0_63 = arith.constant 0 : index
    %c0_64 = arith.constant 0 : index
    %86 = vector.load %arg12[%c0_62, %c0_63, %c0_64] : memref<1x4x128xf32, #tpu.memory_space<vmem>>, vector<1x4x128xf32>
    %87 = vector.shape_cast %86 : vector<1x4x128xf32> to vector<4x128xf32>
    %88 = vector.shape_cast %85 : vector<4x128xf32> to vector<1x4x128xf32>
    tpu.vector_store %arg12[%c0_62, %c0_63, %c0_64], %88 {strides = array<i32>} : memref<1x4x128xf32, #tpu.memory_space<vmem>>, vector<1x4x128xf32>,
    return
  }
  func.func @transform_0(%arg0: i32) -> (i32, i32, i32) {
    %c0_i32 = arith.constant 0 : i32
    %c0_i32_0 = arith.constant 0 : i32
    %c0_i32_1 = arith.constant 0 : i32
    return %arg0, %c0_i32, %c0_i32_0 : i32, i32, i32
  }
  func.func @transform_1(%arg0: i32) -> (i32, i32) {
    %c0_i32 = arith.constant 0 : i32
    %c0_i32_0 = arith.constant 0 : i32
    %c0_i32_1 = arith.constant 0 : i32
    return %c0_i32, %c0_i32_0 : i32, i32
  }
  func.func @transform_2(%arg0: i32) -> (i32, i32) {
    %c0_i32 = arith.constant 0 : i32
    %c0_i32_0 = arith.constant 0 : i32
    %c0_i32_1 = arith.constant 0 : i32
    return %c0_i32, %c0_i32_0 : i32, i32
  }
  func.func @transform_3(%arg0: i32) -> (i32, i32) {
    %c0_i32 = arith.constant 0 : i32
    %c0_i32_0 = arith.constant 0 : i32
    %c0_i32_1 = arith.constant 0 : i32
    return %c0_i32, %c0_i32_0 : i32, i32
  }
  func.func @transform_4(%arg0: i32) -> (i32, i32) {
    %c0_i32 = arith.constant 0 : i32
    %c0_i32_0 = arith.constant 0 : i32
    %c0_i32_1 = arith.constant 0 : i32
    return %c0_i32, %c0_i32_0 : i32, i32
  }
  func.func @transform_5(%arg0: i32) -> (i32, i32) {
    %c0_i32 = arith.constant 0 : i32
    %c0_i32_0 = arith.constant 0 : i32
    %c0_i32_1 = arith.constant 0 : i32
    return %c0_i32, %c0_i32_0 : i32, i32
  }
  func.func @transform_6(%arg0: i32) -> (i32, i32) {
    %c0_i32 = arith.constant 0 : i32
    %c0_i32_0 = arith.constant 0 : i32
    %c0_i32_1 = arith.constant 0 : i32
    return %c0_i32, %c0_i32_0 : i32, i32
  }
  func.func @transform_7(%arg0: i32) -> (i32, i32) {
    %c0_i32 = arith.constant 0 : i32
    %c0_i32_0 = arith.constant 0 : i32
    %c0_i32_1 = arith.constant 0 : i32
    return %c0_i32, %c0_i32_0 : i32, i32
  }
  func.func @transform_8(%arg0: i32) -> (i32, i32) {
    %c0_i32 = arith.constant 0 : i32
    %c0_i32_0 = arith.constant 0 : i32
    %c0_i32_1 = arith.constant 0 : i32
    return %c0_i32, %c0_i32_0 : i32, i32
  }
  func.func @transform_9(%arg0: i32) -> (i32, i32) {
    %c0_i32 = arith.constant 0 : i32
    %c0_i32_0 = arith.constant 0 : i32
    %c0_i32_1 = arith.constant 0 : i32
    return %c0_i32, %c0_i32_0 : i32, i32
  }
  func.func @transform_10(%arg0: i32) -> (i32, i32) {
    %c0_i32 = arith.constant 0 : i32
    %c0_i32_0 = arith.constant 0 : i32
    %c0_i32_1 = arith.constant 0 : i32
    return %c0_i32, %c0_i32_0 : i32, i32
  }
  func.func @transform_11(%arg0: i32) -> (i32, i32, i32) {
    %c0_i32 = arith.constant 0 : i32
    %c0_i32_0 = arith.constant 0 : i32
    %c0_i32_1 = arith.constant 0 : i32
    return %arg0, %c0_i32, %c0_i32_0 : i32, i32, i32
  }
}

</mosaic_0001>

<bundles_post_ra>
// kernel: net_forward.1
= control target key start
LH: loop header
LB: loop body
LE: loop exit
PB: predicated region body
PF: predicated region fallthrough
CT: control target
= control target key end

     0   :  { %16 = vsyncpa [#allocation7], 0  ;;  %s5037_s0 = inlined_call_operand.vmem [shape: f32[8,32,128], index: 0, kind: input, shape index: {}]   ;;  %s5038_s1 = inlined_call_operand.vmem [shape: bf16[640,256], index: 1, kind: input, shape index: {}]   ;;  %s5039_s2 = inlined_call_operand.vmem [shape: f32[1,128], index: 2, kind: input, shape index: {}]   ;;  %s5040_s3 = inlined_call_operand.vmem [shape: bf16[640,256], index: 3, kind: input, shape index: {}]   ;;  %s5041_s4 = inlined_call_operand.vmem [shape: f32[1,128], index: 4, kind: input, shape index: {}]   ;;  %s5042_s5 = inlined_call_operand.vmem [shape: bf16[640,128], index: 5, kind: input, shape index: {}]   ;;  %s5043_s6 = inlined_call_operand.vmem [shape: f32[1,128], index: 6, kind: input, shape index: {}]   ;;  %s5044_s7 = inlined_call_operand.vmem [shape: bf16[128,128], index: 7, kind: input, shape index: {}]   ;;  %s5045_s8 = inlined_call_operand.vmem [shape: f32[1,128], index: 8, kind: input, shape index: {}]   ;;  %s5046_s9 = inlined_call_operand.vmem [shape: bf16[128,128], index: 9, kind: input, shape index: {}]   ;;  %s5047_s10 = inlined_call_operand.vmem [shape: f32[1,128], index: 10, kind: input, shape index: {}]   ;;  %s5048_s11 = inlined_call_operand.hbm [shape: f32[2,4,128], index: 11, kind: output, shape index: {}]  }
   0x1   :  { %18 = vsyncpa [#allocation7 + $0x1], 0  ;;  %s4005_s17 = smov 0   ;;  %s4007_s18 = smov 0  }
   0x2   :  { %s4009_s19 = smov 0   ;;  %s4011_s20 = smov 0  }
   0x3 LB: > { %s4026_s21 = sadd.s32 4294967295, %s3939_s20   ;;  %s3078_s22 = sadd.s32 4294967294, %s3939_s20   ;;  %s3939_s20 = sphi %s4011_s20, %s5056_s20   ;;  %s3935_s19 = sphi %s4009_s19, %s5055_s19   ;;  %s3931_s18 = sphi %s4007_s18, %s5054_s18   ;;  %s3927_s17 = sphi %s4005_s17, %s5053_s17  }
   0x4   : > { %s4030_s23 = sadd.s32 1, %s3939_s20   ;;  %s267_s24 = sadd.s32 1, %s3935_s19 }
   0x5   : > { %s264_s25 = ssub.s32 %s3939_s20, %s4030_s23  ;;  %p277_p0 = scmp.ne.s32.totalorder %s3935_s19, %s3931_s18 }
   0x6   : > { %p265_p1 = scmp.eq.s32.totalorder %s264_s25, 0  ;;  %p278_p2 = scmp.eq.s32.totalorder %s4026_s21, 1 }
   0x7   : > { %p283_p3 = scmp.ne.s32.totalorder %s3931_s18, %s3927_s17  ;;  %p284_p4 = scmp.eq.s32.totalorder %s3078_s22, 1 }
   0x8   : > { %s4041_s26 = scalar_select %p265_p1, %s3935_s19, %s267_s24  }
   0x9   : > { %p4043_p5 = por %p278_p2, %p277_p0  ;;  %p4047_p6 = por %p284_p4, %p283_p3 }
   0xa   : > { %5049 = sst [smem:[#allocation9_spill]] %s4041_s26  ;;  %p3081_p7 = scmp.ge.s32.totalorder %s3939_s20, 1 }
   0xb   : > { %p342_p8 = scmp.lt.s32.totalorder %s3939_s20, 3 }
   0xd   : > { %p343_p9 = pnand %p3081_p7, %p342_p8 }
   0xe   : > { %v3581_v0 = vld [vmem:[%s5038_s1 + $0x4] ss:$8 sps:$4 sm:$0xff] (!%p343_p9)   ;;  %v3583_v1 = vld [vmem:[%s5038_s1] ss:$8 sps:$4 sm:$0xff] (!%p343_p9)   ;;  %v3584_v2 = vld [vmem:[%s5038_s1 + $0x14] ss:$8 sps:$4 sm:$0xff] (!%p343_p9)  }
   0xf   : > { %346 = sbr.rel (%p343_p9) target bundleno = 1528 (0x5f8), region = 64  ;;  %1063 = vmatprep.subr.bf16.mxu0 (!%p343_p9), %v3581_v0  ;;  %v3586_v3 = vld [vmem:[%s5038_s1 + $0x10] ss:$8 sps:$4 sm:$0xff] (!%p343_p9)   ;;  %v3587_v4 = vld [vmem:[%s5038_s1 + $0x24] ss:$8 sps:$4 sm:$0xff] (!%p343_p9)   ;;  %s3083_s29 = sshll.u32 (!%p343_p9), %s4026_s21, 2 }
  0x10   : > { %1064 = vmatpush1.bf16.msra.mxu0 (!%p343_p9), %v3583_v1  ;;  %v3589_v5 = vld [vmem:[%s5038_s1 + $0x20] ss:$8 sps:$4 sm:$0xff] (!%p343_p9)   ;;  %p384_p10 = scmp.lt.s32.totalorder (!%p343_p9), %s3083_s29, 7  ;;  %v3590_v6 = vld [vmem:[%s5038_s1 + $0x34] ss:$8 sps:$4 sm:$0xff] (!%p343_p9)   ;;  %vm495_vm2 = vcmask (!%p343_p9), 1046528  }
  0x11   : > { %1065 = vmatprep.subr.bf16.mxu0 (!%p343_p9), %v3584_v2  ;;  %v3592_v7 = vld [vmem:[%s5038_s1 + $0x30] ss:$8 sps:$4 sm:$0xff] (!%p343_p9)   ;;  %v3593_v8 = vld [vmem:[%s5038_s1 + $0x44] ss:$8 sps:$4 sm:$0xff] (!%p343_p9)   ;;  %v3595_v9 = vld [vmem:[%s5038_s1 + $0x40] ss:$8 sps:$4 sm:$0xff] (!%p343_p9)  }
  0x12   : > { %v3596_v10 = vld [vmem:[%s5038_s1 + $0x54] ss:$8 sps:$4 sm:$0xff] (!%p343_p9)   ;;  %v3598_v11 = vld [vmem:[%s5038_s1 + $0x50] ss:$8 sps:$4 sm:$0xff] (!%p343_p9)   ;;  %v3599_v12 = vld [vmem:[%s5038_s1 + $0x64] ss:$8 sps:$4 sm:$0xff] (!%p343_p9)  }
  0x13   : > { %v3601_v18 = vld [vmem:[%s5038_s1 + $0x60] ss:$8 sps:$4 sm:$0xff] (!%p343_p9)   ;;  %v3602_v20 = vld [vmem:[%s5038_s1 + $0x74] ss:$8 sps:$4 sm:$0xff] (!%p343_p9)   ;;  %vm415_vm0 = vsmask.f32 (!%p343_p9), 7424 }
  0x14   : > { %1066 = vmatpush1.bf16.msra.mxu0 (!%p343_p9), %v3586_v3  ;;  %v3604_v24 = vld [vmem:[%s5038_s1 + $0x70] ss:$8 sps:$4 sm:$0xff] (!%p343_p9)   ;;  %v3605_v30 = vld [vmem:[%s5038_s1 + $0x84] ss:$8 sps:$4 sm:$0xff] (!%p343_p9)   ;;  %v3607_v35 = vld [vmem:[%s5038_s1 + $0x80] ss:$8 sps:$4 sm:$0xff] (!%p343_p9)  }
  0x15   : > { %1067 = vmatprep.subr.bf16.mxu0 (!%p343_p9), %v3587_v4  ;;  %v3608_v37 = vld [vmem:[%s5038_s1 + $0x94] ss:$8 sps:$4 sm:$0xff] (!%p343_p9)   ;;  %vm519_vm1 = vsmask.f32 (!%p343_p9), 6400  ;;  %v3610_v41 = vld [vmem:[%s5038_s1 + $0x90] ss:$8 sps:$4 sm:$0xff] (!%p343_p9)  }
  0x16   : > { %s5058_s29 = smov (!%p384_p10, %s3083_s29), 7  ;;  %v3611_v42 = vld [vmem:[%s5038_s1 + $0xa4] ss:$8 sps:$4 sm:$0xff]   ;;  %v3613_v47 = vld [vmem:[%s5038_s1 + $0xa0] ss:$8 sps:$4 sm:$0xff]   ;;  %vm559_vm3 = vcmask 1045504  }
  0x17   : > { %s3311_s12 = sshll.u32 %s5058_s29, 5  ;;  %v3614_v49 = vld [vmem:[%s5038_s1 + $0xb4] ss:$8 sps:$4 sm:$0xff]   ;;  %v3616_v53 = vld [vmem:[%s5038_s1 + $0xb0] ss:$8 sps:$4 sm:$0xff]   ;;  %vm3943_vm4 = vmmov 0  }
  0x18   : > { %1068 = vmatpush1.bf16.msra.mxu0 %v3589_v5  ;;  %s4090_s16 = scalar_lea.vmem %s5037_s0, %s3311_s12  ;;  %v3617_v54 = vld [vmem:[%s5038_s1 + $0xc4] ss:$8 sps:$4 sm:$0xff]   ;;  %v3619_v60 = vld [vmem:[%s5038_s1 + $0xc0] ss:$8 sps:$4 sm:$0xff]   ;;  %v3620_v62 = vld [vmem:[%s5038_s1 + $0xd4] ss:$8 sps:$4 sm:$0xff]  }
  0x19   : > { %1069 = vmatprep.subr.bf16.mxu0 %v3590_v6  ;;  %v391_v13 = vld [vmem:[%s4090_s16] sm:$0xff]  ;;  %v392_v14 = vld [vmem:[%s4090_s16 + $0x8] sm:$0xff]  ;;  %v393_v15 = vld [vmem:[%s4090_s16 + $0x10] sm:$0xff]  ;;  %s380_s12 = sand.u32 1, %s3931_s18  }
  0x1a   : > { %v394_v16 = vld [vmem:[%s4090_s16 + $0x18] sm:$0xff]  ;;  %v4102_v17 = vpack.c.bf16 %v392_v14, %v391_v13  ;;  %v395_v43 = vld [vmem:[%s4090_s16 + $0x20] sm:$0xff]  ;;  %v396_v45 = vld [vmem:[%s4090_s16 + $0x28] sm:$0xff]  ;;  %s3082_s13 = sshll.u32 %s380_s12, 2  ;;  %s3006_s30 = scalar_lea.sflag [#allocation7], %s380_s12 }
  0x1b   : > { %v4107_v19 = vpack.c.bf16 %v394_v16, %v393_v15  ;;  %v4156_v48 = vpack.c.bf16 %v396_v45, %v395_v43  ;;  %v397_v50 = vld [vmem:[%s4090_s16 + $0x30] sm:$0xff]  ;;  %v398_v51 = vld [vmem:[%s4090_s16 + $0x38] sm:$0xff]  ;;  %v399_v55 = vld [vmem:[%s4090_s16 + $0x40] sm:$0xff]  ;;  %s382_s22 = scalar_lea.vmem [#allocation6], %s3082_s13  ;;  %s3944_s13 = smov [#allocation6]  }
  0x1c   : > { %1070 = vmatpush1.bf16.msra.mxu0 %v3592_v7  ;;  %v417_v21 = vshrl.u32 %v4102_v17, 16  ;;  %v419_v22 = vshll.u32 %v4102_v17, 16  ;;  %v496_v39 = vrot.slane %v4102_v17, 1  ;;  %v4174_v57 = vpack.c.bf16 %v398_v51, %v397_v50  ;;  %v400_v58 = vld [vmem:[%s4090_s16 + $0x48] sm:$0xff]  ;;  %v3622_v1 = vld [vmem:[%s5038_s1 + $0xd0] ss:$8 sps:$4 sm:$0xff]  }
  0x1d   : > { %1071 = vmatprep.subr.bf16.mxu0 %v3593_v8  ;;  %v424_v23 = vshll.u32 %v4107_v19, 16  ;;  %v428_v28 = vshrl.u32 %v4107_v19, 16  ;;  %v497_v40 = vrot.slane %v4107_v19, 1  ;;  %v499_v52 = vrot.slane %v4156_v48, 1  ;;  %v3623_v3 = vld [vmem:[%s5038_s1 + $0xe4] ss:$8 sps:$4 sm:$0xff]  }
  0x1e   : > { %v421_v25 = vrot.slane %v419_v22, 1  ;;  %v520_v26 = vrot.slane %v417_v21, 1  ;;  %v521_v29 = vrot.slane %v419_v22, 2  ;;  %v501_v59 = vrot.slane %v4174_v57, 1  ;;  %v3625_v4 = vld [vmem:[%s5038_s1 + $0xe0] ss:$8 sps:$4 sm:$0xff]  }
  0x1f   : > { %v4118_v27 = vrot.slane %v424_v23, 1  ;;  %v523_v33 = vrot.slane %v428_v28, 1  ;;  %v524_v36 = vrot.slane %v424_v23, 2  ;;  %v4151_v46 = vsel %vm495_vm2, %v496_v39, %v497_v40  ;;  %v3626_v5 = vld [vmem:[%s5038_s1 + $0xf4] ss:$8 sps:$4 sm:$0xff]   ;;  %s3019_s24 = sshll.u32 %s382_s22, 4  ;;  %s4997_s24 = int_to_ptr.vmem [resolvable:$true] %s3019_s24 }
  0x20   : > { %1072 = vmatpush1.bf16.msra.mxu0 %v3595_v9  ;;  %v422_v31 = vor.u32 %v421_v25, %v417_v21  ;;  %v522_v32 = vor.u32 %v521_v29, %v520_v26  ;;  %v4172_v56 = vsel %vm495_vm2, %v497_v40, %v499_v52  ;;  %v4181_v61 = vpack.c.bf16 %v400_v58, %v399_v55  ;;  %v3628_v7 = vld [vmem:[%s5038_s1 + $0xf0] ss:$8 sps:$4 sm:$0xff]   ;;  %v3631_v8 = vld [vmem:[%s5038_s1 + $0x104] ss:$8 sps:$4 sm:$0xff]   ;;  %v3629_v13 = vld [vmem:[%s5038_s1 + $0x100] ss:$8 sps:$4 sm:$0xff]  }
  0x21   : > { %1073 = vmatprep.subr.bf16.mxu0 %v3596_v10  ;;  %v4134_v38 = vor.u32 %v524_v36, %v523_v33  ;;  %v4187_v63 = vsel %vm495_vm2, %v499_v52, %v501_v59  ;;  %v432_v6 = vshll.u32 %v4156_v48, 16  ;;  %v560_v9 = vrot.slane %v4102_v17, 2  ;;  %v3634_v15 = vld [vmem:[%s5038_s1 + $0x114] ss:$8 sps:$4 sm:$0xff]   ;;  %v3632_v21 = vld [vmem:[%s5038_s1 + $0x110] ss:$8 sps:$4 sm:$0xff]  }
  0x22   : > { %v427_v34 = vsel %vm415_vm0, %v422_v31, %v4118_v27  ;;  %v503_v0 = vrot.slane %v4181_v61, 1  ;;  %v561_v10 = vrot.slane %v4107_v19, 2  ;;  %v3637_v22 = vld [vmem:[%s5038_s1 + $0x124] ss:$8 sps:$4 sm:$0xff]   ;;  %v563_v23 = vrot.slane %v4156_v48, 2  ;;  %v402_v29 = vld [vmem:[%s4090_s16 + $0x58] sm:$0xff] }
  0x23   : > { %1095 = vmatprep.mubr.bf16.mxu0 %v427_v34  ;;  %v4147_v44 = vsel %vm519_vm1, %v522_v32, %v4134_v38  ;;  %v444_v31 = vshrl.u32 %v4174_v57, 16  ;;  %v448_v32 = vshll.u32 %v4181_v61, 16  ;;  %v3638_v33 = vld [vmem:[%s5038_s1 + $0x130] ss:$8 sps:$4 sm:$0xff]   ;;  %v3643_v34 = vld [vmem:[%s5038_s1 + $0x144] ss:$8 sps:$4 sm:$0xff]  }
  0x24   : > { %1074 = vmatpush1.bf16.msra.mxu0 %v3598_v11  ;;  %v4196_v2 = vsel %vm495_vm2, %v501_v59, %v503_v0  ;;  %v430_v11 = vor.u32 %v428_v28, %v4118_v27  ;;  %v4225_v14 = vsel %vm559_vm3, %v560_v9, %v561_v10  ;;  %v4249_v26 = vsel %vm559_vm3, %v561_v10, %v563_v23  ;;  %v3640_v27 = vld [vmem:[%s5038_s1 + $0x134] ss:$8 sps:$4 sm:$0xff]   ;;  %v404_v36 = vld [vmem:[%s4090_s16 + $0x68] sm:$0xff]  ;;  %v3644_v51 = vld [vmem:[%s5038_s1 + $0x150] ss:$8 sps:$4 sm:$0xff]   ;;  %s3881_s14 = sshll.u32 %s3944_s13, 4  ;;  %s3882_s14 = int_to_ptr.vmem [resolvable:$false] %s3881_s14 }
  0x25   : > { %1075 = vmatprep.subr.bf16.mxu0 %v3599_v12  ;;  %v434_v12 = vrot.slane %v432_v6, 1  ;;  %v401_v28 = vld [vmem:[%s4090_s16 + $0x50] sm:$0xff]  ;;  %v450_v40 = vrot.slane %v448_v32, 1  ;;  %v3649_v52 = vld [vmem:[%s5038_s1 + $0x164] ss:$8 sps:$4 sm:$0xff]   ;;  %v567_v55 = vrot.slane %v4181_v61, 2  ;;  %p3884_p0 = scmp.lt.s32.totalorder %s4997_s24, %s3882_s14 }
  0x26   : > { %v3646_v43 = vld [vmem:[%s5038_s1 + $0x154] ss:$8 sps:$4 sm:$0xff]   ;;  %v3650_v9 = vld [vmem:[%s5038_s1 + $0x170] ss:$8 sps:$4 sm:$0xff]   ;;  %v3655_v10 = vld [vmem:[%s5038_s1 + $0x184] ss:$8 sps:$4 sm:$0xff]  }
  0x27   : > { %v435_v16 = vsel %vm415_vm0, %v430_v11, %v434_v12  ;;  %s3883_s15 = scalar_lea.vmem %s3882_s14, 128 }
  0x28   : > { %1076 = vmatpush1.bf16.msra.mxu0 %v3601_v18  ;;  %v436_v18 = vshrl.u32 %v4156_v48, 16 }
  0x29   : > { %1077 = vmatprep.subr.bf16.mxu0 %v3602_v20  ;;  %v440_v20 = vshll.u32 %v4174_v57, 16 }
  0x2b   : > { %v442_v25 = vrot.slane %v440_v20, 1 }
  0x2c   : > { %1078 = vmatpush1.bf16.msra.mxu0 %v3604_v24  ;;  %v438_v24 = vor.u32 %v436_v18, %v434_v12 }
  0x2d   : > { %1079 = vmatprep.subr.bf16.mxu0 %v3605_v30  ;;  %v446_v39 = vor.u32 %v444_v31, %v442_v25 }
  0x2e   : > { %v443_v30 = vsel %vm415_vm0, %v438_v24, %v442_v25  ;;  %v527_v25 = vrot.slane %v436_v18, 1  ;;  %v3662_v18 = vld [vmem:[%s5038_s1 + $0x1b0] ss:$8 sps:$4 sm:$0xff]  }
  0x2f   : > { %v451_v45 = vsel %vm415_vm0, %v446_v39, %v450_v40  ;;  %v3668_v39 = vld [vmem:[%s5038_s1 + $0x1d0] ss:$8 sps:$4 sm:$0xff]  }
  0x30   : > { %1080 = vmatpush1.bf16.msra.mxu0 %v3607_v35  ;;  %v403_v35 = vld [vmem:[%s4090_s16 + $0x60] sm:$0xff] }
  0x31   : > { %1081 = vmatprep.subr.bf16.mxu0 %v3608_v37  ;;  %v565_v37 = vrot.slane %v4174_v57, 2  ;;  %v4287_v50 = vpack.c.bf16 %v404_v36, %v403_v35  ;;  %v3665_v35 = vld [vmem:[%s5038_s1 + $0x1c0] ss:$8 sps:$4 sm:$0xff]   ;;  %v3670_v36 = vld [vmem:[%s5038_s1 + $0x1d4] ss:$8 sps:$4 sm:$0xff]  }
  0x34   : > { %1082 = vmatpush1.bf16.msra.mxu0 %v3610_v41  ;;  %v3641_v41 = vld [vmem:[%s5038_s1 + $0x140] ss:$8 sps:$4 sm:$0xff]  }
  0x35   : > { %1083 = vmatprep.subr.bf16.mxu0 %v3611_v42  ;;  %v4279_v42 = vsel %vm559_vm3, %v563_v23, %v565_v37  ;;  %v3661_v23 = vld [vmem:[%s5038_s1 + $0x1a4] ss:$8 sps:$4 sm:$0xff]  }
  0x38   : > { %1084 = vmatpush1.bf16.msra.mxu0 %v3613_v47  ;;  %v452_v47 = vshrl.u32 %v4181_v61, 16 }
  0x39   : > { %1085 = vmatprep.subr.bf16.mxu0 %v3614_v49 }
  0x3a   : > { %v454_v58 = vor.u32 %v452_v47, %v450_v40  ;;  %v3676_v40 = vld [vmem:[%s5038_s1 + $0x1f4] ss:$8 sps:$4 sm:$0xff]  }
  0x3c   : > { %1086 = vmatpush1.bf16.msra.mxu0 %v3616_v53  ;;  %v405_v53 = vld [vmem:[%s4090_s16 + $0x70] sm:$0xff] }
  0x3d   : > { %1087 = vmatprep.subr.bf16.mxu0 %v3617_v54  ;;  %v406_v54 = vld [vmem:[%s4090_s16 + $0x78] sm:$0xff]  ;;  %s3308_s16 = sshll.u32 %s4026_s21, 6  ;;  %s3877_s21 = scalar_lea.vmem %s4997_s24, 64 }
  0x3e   : > { %s4995_s26 = scalar_lea.hbm %s5048_s11, %s3308_s16  ;;  %p3878_p11 = scmp.ne.s32.totalorder %s4997_s24, %s3877_s21 }
  0x3f   : > { %p3885_p1 = scmp.lt.s32.totalorder %s3883_s15, %s3877_s21 }
  0x40   : > { %1088 = vmatpush1.bf16.msra.mxu0 %v3619_v60  ;;  %p3879_p12 = pnand %p3878_p11, %p4043_p5 }
  0x41   : > { %1089 = vmatprep.subr.bf16.mxu0 %v3620_v62  ;;  %v464_v62 = vshll.u32 %v4287_v50, 16  ;;  %p3886_p2 = por %p3885_p1, %p3884_p0 }
  0x42   : > { %p3880_p13 = pneg %p3879_p12 }
  0x43   : > { %v466_v11 = vrot.slane %v464_v62, 1 }
  0x44   : > { %1090 = vmatpush1.bf16.msra.mxu0 %v3622_v1  ;;  %v3647_v1 = vld [vmem:[%s5038_s1 + $0x160] ss:$8 sps:$4 sm:$0xff]   ;;  %p3887_p3 = pnand %p3886_p2, %p3880_p13 }
  0x45   : > { %1091 = vmatprep.subr.bf16.mxu0 %v3623_v3  ;;  %v468_v3 = vshrl.u32 %v4287_v50, 16 }
  0x48   : > { %1092 = vmatpush1.bf16.msra.mxu0 %v3625_v4  ;;  %v4312_v4 = vsel %vm559_vm3, %v565_v37, %v567_v55 }
  0x49   : > { %1093 = vmatprep.subr.bf16.mxu0 %v3626_v5  ;;  %v3652_v5 = vld [vmem:[%s5038_s1 + $0x174] ss:$8 sps:$4 sm:$0xff]  }
  0x4c   : > { %1094 = vmatpush1.bf16.msra.mxu0 %v3628_v7  ;;  %v4317_v7 = vpack.c.bf16 %v406_v54, %v405_v53  ;;  %v3706_v54 = vld [vmem:[%s5040_s3 + $0x10] ss:$8 sps:$4 sm:$0xff]  }
  0x4d   : > { %1176 = vmatprep.subr.bf16.mxu0 %v3631_v8 }
  0x4e   : > { %v472_v12 = vshll.u32 %v4317_v7, 16 }
  0x4f   : > { %1096 = vmatmul.mubr.bf16.vlgmr.msra.gmra.mrb[0].mxu0 %v4102_v17  ;;  %v3635_v17 = vld [vmem:[%s5038_s1 + $0x120] ss:$8 sps:$4 sm:$0xff]  }
  0x50   : > { %1177 = vmatpush1.bf16.msra.mxu0 %v3629_v13  ;;  %1105 = vmatprep.mubr.bf16.mxu0 %v435_v16  ;;  %v3658_v16 = vld [vmem:[%s5038_s1 + $0x194] ss:$8 sps:$4 sm:$0xff]   ;;  %v474_v24 = vrot.slane %v472_v12, 1 }
  0x51   : > { %1178 = vmatprep.subr.bf16.mxu0 %v3634_v15  ;;  %v3653_v15 = vld [vmem:[%s5038_s1 + $0x180] ss:$8 sps:$4 sm:$0xff]  }
  0x54   : > { %1179 = vmatpush1.bf16.msra.mxu0 %v3632_v21 }
  0x55   : > { %1180 = vmatprep.subr.bf16.mxu0 %v3637_v22  ;;  %v3656_v22 = vld [vmem:[%s5038_s1 + $0x190] ss:$8 sps:$4 sm:$0xff]  }
  0x57   : > { %1106 = vmatmul.mubr.bf16.gmra.mrb[4].mxu0 %v4107_v19  ;;  %v4273_v19 = vpack.c.bf16 %v402_v29, %v401_v28  ;;  %v3664_v28 = vld [vmem:[%s5038_s1 + $0x1b4] ss:$8 sps:$4 sm:$0xff]  }
  0x58   : > { %1181 = vmatpush1.bf16.msra.mxu0 %v3635_v17  ;;  %1115 = vmatprep.mubr.bf16.mxu0 %v443_v30  ;;  %v470_v17 = vor.u32 %v468_v3, %v466_v11  ;;  %v3667_v30 = vld [vmem:[%s5038_s1 + $0x1c4] ss:$8 sps:$4 sm:$0xff]  }
  0x59   : > { %1182 = vmatprep.subr.bf16.mxu0 %v3640_v27  ;;  %v456_v49 = vshll.u32 %v4273_v19, 16  ;;  %v460_v60 = vshrl.u32 %v4273_v19, 16  ;;  %v3659_v27 = vld [vmem:[%s5038_s1 + $0x1a0] ss:$8 sps:$4 sm:$0xff]  }
  0x5a   : > { %v475_v29 = vsel %vm415_vm0, %v470_v17, %v474_v24 }
  0x5b   : > { %v458_v59 = vrot.slane %v456_v49, 1  ;;  %v540_v17 = vrot.slane %v456_v49, 2  ;;  %v3695_v49 = vld [vmem:[%s5038_s1 + $0x260] ss:$8 sps:$4 sm:$0xff]  }
  0x5c   : > { %1183 = vmatpush1.bf16.msra.mxu0 %v3638_v33  ;;  %v476_v33 = vshrl.u32 %v4317_v7, 16 }
  0x5d   : > { %1184 = vmatprep.subr.bf16.mxu0 %v3643_v34  ;;  %v459_v8 = vsel %vm415_vm0, %v454_v58, %v458_v59  ;;  %v462_v13 = vor.u32 %v460_v60, %v458_v59  ;;  %v528_v34 = vrot.slane %v432_v6, 2  ;;  %v3671_v6 = vld [vmem:[%s5038_s1 + $0x1e0] ss:$8 sps:$4 sm:$0xff]   ;;  %v3707_v58 = vld [vmem:[%s5040_s3 + $0x24] ss:$8 sps:$4 sm:$0xff]  }
  0x5e   : > { %v478_v37 = vor.u32 %v476_v33, %v474_v24  ;;  %v3689_v24 = vld [vmem:[%s5038_s1 + $0x240] ss:$8 sps:$4 sm:$0xff]  }
  0x5f   : > { %1116 = vmatmul.mubr.bf16.gmra.mrb[8].mxu0 %v4156_v48  ;;  %v467_v21 = vsel %vm415_vm0, %v462_v13, %v466_v11  ;;  %v3673_v48 = vld [vmem:[%s5038_s1 + $0x1e4] ss:$8 sps:$4 sm:$0xff]   ;;  %v529_v53 = vor.u32 %v528_v34, %v527_v25  ;;  %v3683_v11 = vld [vmem:[%s5038_s1 + $0x220] ss:$8 sps:$4 sm:$0xff]   ;;  %v539_v25 = vrot.slane %v460_v60, 1 }
  0x60   : > { %1185 = vmatpush1.bf16.msra.mxu0 %v3641_v41  ;;  %1125 = vmatprep.mubr.bf16.mxu0 %v451_v45  ;;  %v3701_v41 = vld [vmem:[%s5040_s3 + $0x4] ss:$8 sps:$4 sm:$0xff]   ;;  %v3704_v45 = vld [vmem:[%s5040_s3 + $0x14] ss:$8 sps:$4 sm:$0xff]  }
  0x61   : > { %1186 = vmatprep.subr.bf16.mxu0 %v3646_v43  ;;  %v3703_v43 = vld [vmem:[%s5040_s3] ss:$8 sps:$4 sm:$0xff]   ;;  %2044 = vmatprep.subr.bf16.mxu1 %v3701_v41  ;;  %v530_v59 = vsel %vm519_vm1, %v4134_v38, %v529_v53  ;;  %v3710_v38 = vld [vmem:[%s5040_s3 + $0x34] ss:$8 sps:$4 sm:$0xff]   ;;  %v3697_v60 = vld [vmem:[%s5038_s1 + $0x264] ss:$8 sps:$4 sm:$0xff]  }
  0x62   : > { %2045 = vmatpush1.bf16.msra.mxu1 %v3703_v43  ;;  %v3700_v34 = vld [vmem:[%s5038_s1 + $0x274] ss:$8 sps:$4 sm:$0xff]   ;;  %v3941_v43 = vmov 0  }
  0x63   : > { %2046 = vmatprep.subr.bf16.mxu1 %v3704_v45 }
  0x64   : > { %1187 = vmatpush1.bf16.msra.mxu0 %v3644_v51  ;;  %v3674_v51 = vld [vmem:[%s5038_s1 + $0x1f0] ss:$8 sps:$4 sm:$0xff]  }
  0x65   : > { %1188 = vmatprep.subr.bf16.mxu0 %v3649_v52  ;;  %v3679_v52 = vld [vmem:[%s5038_s1 + $0x204] ss:$8 sps:$4 sm:$0xff]  }
  0x66   : > { %2047 = vmatpush1.bf16.msra.mxu1 %v3706_v54  ;;  %v3728_v54 = vld [vmem:[%s5040_s3 + $0x94] ss:$8 sps:$4 sm:$0xff]  }
  0x67   : > { %1126 = vmatmul.mubr.bf16.gmra.mrb[12].mxu0 %v4174_v57  ;;  %2048 = vmatprep.subr.bf16.mxu1 %v3707_v58  ;;  %v3730_v58 = vld [vmem:[%s5040_s3 + $0x90] ss:$8 sps:$4 sm:$0xff]  }
  0x68   : > { %1189 = vmatpush1.bf16.msra.mxu0 %v3647_v1  ;;  %1135 = vmatprep.mubr.bf16.mxu0 %v459_v8  ;;  %v3682_v1 = vld [vmem:[%s5038_s1 + $0x214] ss:$8 sps:$4 sm:$0xff]   ;;  %v532_v8 = vrot.slane %v440_v20, 2  ;;  %v3685_v20 = vld [vmem:[%s5038_s1 + $0x224] ss:$8 sps:$4 sm:$0xff]  }
  0x69   : > { %1190 = vmatprep.subr.bf16.mxu0 %v3652_v5  ;;  %v531_v5 = vrot.slane %v444_v31, 1  ;;  %v3680_v31 = vld [vmem:[%s5038_s1 + $0x210] ss:$8 sps:$4 sm:$0xff]  }
  0x6b   : > { %v533_v57 = vor.u32 %v532_v8, %v531_v5  ;;  %v3736_v5 = vld [vmem:[%s5040_s3 + $0xb0] ss:$8 sps:$4 sm:$0xff]   ;;  %v3737_v8 = vld [vmem:[%s5040_s3 + $0xc4] ss:$8 sps:$4 sm:$0xff]  }
  0x6c   : > { %1191 = vmatpush1.bf16.msra.mxu0 %v3650_v9  ;;  %v3709_v9 = vld [vmem:[%s5040_s3 + $0x20] ss:$8 sps:$4 sm:$0xff]  }
  0x6d   : > { %1192 = vmatprep.subr.bf16.mxu0 %v3655_v10  ;;  %2049 = vmatpush1.bf16.msra.mxu1 %v3709_v9  ;;  %v3713_v10 = vld [vmem:[%s5040_s3 + $0x44] ss:$8 sps:$4 sm:$0xff]   ;;  %v534_v13 = vsel %vm519_vm1, %v529_v53, %v533_v57  ;;  %v3727_v53 = vld [vmem:[%s5040_s3 + $0x80] ss:$8 sps:$4 sm:$0xff]  }
  0x6e   : > { %2050 = vmatprep.subr.bf16.mxu1 %v3710_v38  ;;  %v3739_v9 = vld [vmem:[%s5040_s3 + $0xc0] ss:$8 sps:$4 sm:$0xff]   ;;  %v3740_v38 = vld [vmem:[%s5040_s3 + $0xd4] ss:$8 sps:$4 sm:$0xff]  }
  0x6f   : > { %1136 = vmatmul.mubr.bf16.gmra.mrb[16].mxu0 %v4181_v61  ;;  %v3716_v61 = vld [vmem:[%s5040_s3 + $0x54] ss:$8 sps:$4 sm:$0xff]  }
  0x70   : > { %1193 = vmatpush1.bf16.msra.mxu0 %v3653_v15  ;;  %1145 = vmatprep.mubr.bf16.mxu0 %v467_v21  ;;  %v535_v15 = vrot.slane %v452_v47, 1  ;;  %v3688_v21 = vld [vmem:[%s5038_s1 + $0x234] ss:$8 sps:$4 sm:$0xff]   ;;  %v3686_v47 = vld [vmem:[%s5038_s1 + $0x230] ss:$8 sps:$4 sm:$0xff]  }
  0x71   : > { %1194 = vmatprep.subr.bf16.mxu0 %v3658_v16  ;;  %v536_v16 = vrot.slane %v448_v32, 2  ;;  %v3691_v32 = vld [vmem:[%s5038_s1 + $0x244] ss:$8 sps:$4 sm:$0xff]  }
  0x74   : > { %1195 = vmatpush1.bf16.msra.mxu0 %v3656_v22  ;;  %v3715_v22 = vld [vmem:[%s5040_s3 + $0x40] ss:$8 sps:$4 sm:$0xff]  }
  0x75   : > { %1196 = vmatprep.subr.bf16.mxu0 %v3661_v23  ;;  %v537_v23 = vor.u32 %v536_v16, %v535_v15 }
  0x77   : > { %1146 = vmatmul.mubr.bf16.gmra.mrb[20].mxu0 %v4273_v19 }
  0x78   : > { %1197 = vmatpush1.bf16.msra.mxu0 %v3659_v27  ;;  %1155 = vmatprep.mubr.bf16.mxu0 %v475_v29  ;;  %v3694_v27 = vld [vmem:[%s5038_s1 + $0x254] ss:$8 sps:$4 sm:$0xff]   ;;  %v541_v29 = vor.u32 %v540_v17, %v539_v25 }
  0x79   : > { %1198 = vmatprep.subr.bf16.mxu0 %v3664_v28  ;;  %v3692_v28 = vld [vmem:[%s5038_s1 + $0x250] ss:$8 sps:$4 sm:$0xff]  }
  0x7c   : > { %1199 = vmatpush1.bf16.msra.mxu0 %v3662_v18  ;;  %v542_v18 = vsel %vm519_vm1, %v537_v23, %v541_v29 }
  0x7d   : > { %1200 = vmatprep.subr.bf16.mxu0 %v3667_v30  ;;  %v544_v30 = vrot.slane %v464_v62, 2 }
  0x7f   : > { %1156 = vmatmul.mubr.bf16.gmra.mrb[24].mxu0 %v4287_v50 }
  0x80   : > { %1201 = vmatpush1.bf16.msra.mxu0 %v3665_v35  ;;  %1165 = vmatprep.mubr.bf16.mxu0 %v478_v37  ;;  %v505_v35 = vrot.slane %v4273_v19, 1 }
  0x81   : > { %1202 = vmatprep.subr.bf16.mxu0 %v3670_v36  ;;  %v3698_v36 = vld [vmem:[%s5038_s1 + $0x270] ss:$8 sps:$4 sm:$0xff]  }
  0x82   : > { %v506_v62 = vsel %vm495_vm2, %v503_v0, %v505_v35  ;;  %v509_v0 = vrot.slane %v4317_v7, 1 }
  0x84   : > { %1203 = vmatpush1.bf16.msra.mxu0 %v3668_v39  ;;  %v548_v39 = vrot.slane %v472_v12, 2  ;;  %v569_v12 = vrot.slane %v4273_v19, 2  ;;  %v3718_v19 = vld [vmem:[%s5040_s3 + $0x50] ss:$8 sps:$4 sm:$0xff]  }
  0x85   : > { %1204 = vmatprep.subr.bf16.mxu0 %v3673_v48  ;;  %v507_v48 = vrot.slane %v4287_v50, 1 }
  0x87   : > { %1166 = vmatmul.mubr.bf16.gmra.mrb[28].mxu0 %v4317_v7 }
  0x88   : > { %1205 = vmatpush1.bf16.msra.mxu0 %v3671_v6  ;;  %1208 = vmatprep.mubr.bf16.mxu0 %v4147_v44  ;;  %v3677_v44 = vld [vmem:[%s5038_s1 + $0x200] ss:$8 sps:$4 sm:$0xff]  }
  0x89   : > { %1206 = vmatprep.subr.bf16.mxu0 %v3676_v40  ;;  %v508_v40 = vsel %vm495_vm2, %v505_v35, %v507_v48 }
  0x8c   : > { %1207 = vmatpush1.bf16.msra.mxu0 %v3674_v51  ;;  %v3724_v51 = vld [vmem:[%s5040_s3 + $0x70] ss:$8 sps:$4 sm:$0xff]  }
  0x8d   : > { %1289 = vmatprep.subr.bf16.mxu0 %v3679_v52  ;;  %v3725_v52 = vld [vmem:[%s5040_s3 + $0x84] ss:$8 sps:$4 sm:$0xff]  }
  0x8f   : > { %1209 = vmatmul.mubr.bf16.vlgmr.msra.gmra.mrb[0].mxu0 %v4151_v46  ;;  %v3712_v46 = vld [vmem:[%s5040_s3 + $0x30] ss:$8 sps:$4 sm:$0xff]  }
  0x90   : > { %1290 = vmatpush1.bf16.msra.mxu0 %v3677_v44  ;;  %1218 = vmatprep.mubr.bf16.mxu0 %v530_v59  ;;  %v3731_v44 = vld [vmem:[%s5040_s3 + $0xa4] ss:$8 sps:$4 sm:$0xff]   ;;  %v3733_v59 = vld [vmem:[%s5040_s3 + $0xa0] ss:$8 sps:$4 sm:$0xff]  }
  0x91   : > { %1291 = vmatprep.subr.bf16.mxu0 %v3682_v1  ;;  %2051 = vmatpush1.bf16.msra.mxu1 %v3712_v46  ;;  %v3734_v1 = vld [vmem:[%s5040_s3 + $0xb4] ss:$8 sps:$4 sm:$0xff]  }
  0x92   : > { %2052 = vmatprep.subr.bf16.mxu1 %v3713_v10  ;;  %v3746_v46 = vld [vmem:[%s5040_s3 + $0xf4] ss:$8 sps:$4 sm:$0xff]   ;;  %v3748_v10 = vld [vmem:[%s5040_s3 + $0xf0] ss:$8 sps:$4 sm:$0xff]  }
  0x94   : > { %1292 = vmatpush1.bf16.msra.mxu0 %v3680_v31  ;;  %v3742_v31 = vld [vmem:[%s5040_s3 + $0xd0] ss:$8 sps:$4 sm:$0xff]  }
  0x95   : > { %1293 = vmatprep.subr.bf16.mxu0 %v3685_v20  ;;  %2053 = vmatpush1.bf16.msra.mxu1 %v3715_v22  ;;  %v3745_v20 = vld [vmem:[%s5040_s3 + $0xe0] ss:$8 sps:$4 sm:$0xff]  }
  0x96   : > { %2054 = vmatprep.subr.bf16.mxu1 %v3716_v61 }
  0x97   : > { %1219 = vmatmul.mubr.bf16.gmra.mrb[4].mxu0 %v4172_v56  ;;  %v538_v56 = vsel %vm519_vm1, %v533_v57, %v537_v23  ;;  %v3743_v57 = vld [vmem:[%s5040_s3 + $0xe4] ss:$8 sps:$4 sm:$0xff]  }
  0x98   : > { %1228 = vmatprep.mubr.bf16.mxu0 %v534_v13  ;;  %1294 = vmatpush1.bf16.msra.mxu0 %v3683_v11  ;;  %v3751_v11 = vld [vmem:[%s5040_s3 + $0x104] ss:$8 sps:$4 sm:$0xff]  }
  0x99   : > { %1295 = vmatprep.subr.bf16.mxu0 %v3688_v21  ;;  %2055 = vmatpush1.bf16.msra.mxu1 %v3718_v19 }
  0x9c   : > { %1296 = vmatpush1.bf16.msra.mxu0 %v3686_v47 }
  0x9d   : > { %1297 = vmatprep.subr.bf16.mxu0 %v3691_v32 }
  0x9f   : > { %1229 = vmatmul.mubr.bf16.gmra.mrb[8].mxu0 %v4187_v63  ;;  %v543_v63 = vrot.slane %v468_v3, 1  ;;  %v547_v3 = vrot.slane %v476_v33, 1  ;;  %v510_v33 = vsel %vm495_vm2, %v507_v48, %v509_v0 }
  0xa0   : > { %1238 = vmatprep.mubr.bf16.mxu0 %v538_v56  ;;  %1298 = vmatpush1.bf16.msra.mxu0 %v3689_v24 }
  0xa1   : > { %1299 = vmatprep.subr.bf16.mxu0 %v3694_v27  ;;  %v545_v37 = vor.u32 %v544_v30, %v543_v63  ;;  %v549_v6 = vor.u32 %v548_v39, %v547_v3 }
  0xa3   : > { %v550_v41 = vsel %vm519_vm1, %v545_v37, %v549_v6 }
  0xa4   : > { %1300 = vmatpush1.bf16.msra.mxu0 %v3692_v28 }
  0xa5   : > { %1301 = vmatprep.subr.bf16.mxu0 %v3697_v60 }
  0xa7   : > { %1239 = vmatmul.mubr.bf16.gmra.mrb[12].mxu0 %v4196_v2  ;;  %v546_v2 = vsel %vm519_vm1, %v541_v29, %v545_v37  ;;  %v4604_v29 = vld [vmem:[%s5039_s2] ss:$0 sm:$0xff] }
  0xa8   : > { %1248 = vmatprep.mubr.bf16.mxu0 %v542_v18  ;;  %1302 = vmatpush1.bf16.msra.mxu0 %v3695_v49 }
  0xa9   : > { %1303 = vmatprep.subr.bf16.mxu0 %v3700_v34 }
  0xac   : > { %1304 = vmatpush1.bf16.msra.mxu0 %v3698_v36 }
  0xaf   : > { %1249 = vmatmul.mubr.bf16.gmra.mrb[16].mxu0 %v506_v62 }
  0xb0   : > { %1258 = vmatprep.mubr.bf16.mxu0 %v546_v2 }
  0xb7   : > { %1259 = vmatmul.mubr.bf16.gmra.mrb[20].mxu0 %v508_v40 }
  0xb8   : > { %1268 = vmatprep.mubr.bf16.mxu0 %v550_v41 }
  0xbf   : > { %1269 = vmatmul.mubr.bf16.gmra.mrb[24].mxu0 %v510_v33 }
  0xc0   : > { %1278 = vmatprep.mubr.bf16.mxu0 %v549_v6 }
  0xc7   : > { %1279 = vmatmul.mubr.bf16.gmra.mrb[28].mxu0 %v509_v0 }
  0xc8   : > { %1321 = vmatprep.mubr.bf16.mxu0 %v3941_v43 }
  0xcf   : > { %1322 = vmatmul.mubr.bf16.vlgmr.msra.gmra.mrb[0].mxu0 %v4225_v14  ;;  %v570_v14 = vsel %vm559_vm3, %v567_v55, %v569_v12  ;;  %v3721_v55 = vld [vmem:[%s5040_s3 + $0x60] ss:$8 sps:$4 sm:$0xff]  }
  0xd0   : > { %1331 = vmatprep.mubr.bf16.mxu0 %v3941_v43 }
  0xd7   : > { %1332 = vmatmul.mubr.bf16.gmra.mrb[4].mxu0 %v4249_v26  ;;  %v571_v26 = vrot.slane %v4287_v50, 2  ;;  %v3719_v50 = vld [vmem:[%s5040_s3 + $0x64] ss:$8 sps:$4 sm:$0xff]  }
  0xd8   : > { %1341 = vmatprep.mubr.bf16.mxu0 %v3941_v43  ;;  %2056 = vmatprep.subr.bf16.mxu1 %v3719_v50 }
  0xd9   : > { %v572_v45 = vsel %vm559_vm3, %v569_v12, %v571_v26  ;;  %2057 = vmatpush1.bf16.msra.mxu1 %v3721_v55 }
  0xdf   : > { %1342 = vmatmul.mubr.bf16.gmra.mrb[8].mxu0 %v4279_v42  ;;  %v573_v42 = vrot.slane %v4317_v7, 2  ;;  %v3722_v7 = vld [vmem:[%s5040_s3 + $0x74] ss:$8 sps:$4 sm:$0xff]  }
  0xe0   : > { %1351 = vmatprep.mubr.bf16.mxu0 %v3941_v43  ;;  %2058 = vmatprep.subr.bf16.mxu1 %v3722_v7 }
  0xe1   : > { %2059 = vmatpush1.bf16.msra.mxu1 %v3724_v51 }
  0xe2   : > { %2060 = vmatprep.subr.bf16.mxu1 %v3725_v52 }
  0xe5   : > { %2061 = vmatpush1.bf16.msra.mxu1 %v3727_v53 }
  0xe6   : > { %2062 = vmatprep.subr.bf16.mxu1 %v3728_v54 }
  0xe7   : > { %1352 = vmatmul.mubr.bf16.gmra.mrb[12].mxu0 %v4312_v4  ;;  %v574_v4 = vsel %vm559_vm3, %v571_v26, %v573_v42 }
  0xe8   : > { %1361 = vmatprep.mubr.bf16.mxu0 %v3941_v43 }
  0xe9   : > { %2063 = vmatpush1.bf16.msra.mxu1 %v3730_v58 }
  0xea   : > { %2064 = vmatprep.subr.bf16.mxu1 %v3731_v44 }
  0xed   : > { %2065 = vmatpush1.bf16.msra.mxu1 %v3733_v59 }
  0xee   : > { %2066 = vmatprep.subr.bf16.mxu1 %v3734_v1 }
  0xef   : > { %1362 = vmatmul.mubr.bf16.gmra.mrb[16].mxu0 %v570_v14 }
  0xf0   : > { %1371 = vmatprep.mubr.bf16.mxu0 %v3941_v43 }
  0xf1   : > { %2067 = vmatpush1.bf16.msra.mxu1 %v3736_v5 }
  0xf2   : > { %2068 = vmatprep.subr.bf16.mxu1 %v3737_v8 }
  0xf5   : > { %2069 = vmatpush1.bf16.msra.mxu1 %v3739_v9 }
  0xf6   : > { %2070 = vmatprep.subr.bf16.mxu1 %v3740_v38 }
  0xf7   : > { %1372 = vmatmul.mubr.bf16.gmra.mrb[20].mxu0 %v572_v45 }
  0xf8   : > { %1381 = vmatprep.mubr.bf16.mxu0 %v3941_v43 }
  0xf9   : > { %2071 = vmatpush1.bf16.msra.mxu1 %v3742_v31 }
  0xfa   : > { %2072 = vmatprep.subr.bf16.mxu1 %v3743_v57 }
  0xfd   : > { %2073 = vmatpush1.bf16.msra.mxu1 %v3745_v20 }
  0xfe   : > { %2074 = vmatprep.subr.bf16.mxu1 %v3746_v46  ;;  %v3749_v46 = vld [vmem:[%s5040_s3 + $0x100] ss:$8 sps:$4 sm:$0xff]  }
  0xff   : > { %1382 = vmatmul.mubr.bf16.gmra.mrb[24].mxu0 %v574_v4 }
 0x100   : > { %1391 = vmatprep.mubr.bf16.mxu0 %v3941_v43 }
 0x101   : > { %2075 = vmatpush1.bf16.msra.mxu1 %v3748_v10 }
 0x102   : > { %2117 = vmatprep.subr.bf16.mxu1 %v3751_v11 }
 0x107   : > { %1392 = vmatmul.mubr.bf16.gmra.mrb[28].mxu0 %v573_v42 }
 0x1a2   : > { %v1323_v13 = vpop.f32.mrb[0].mxu0 }
 0x1a3   : > { %v1325_v15 = vpop.f32.mrb[1].mxu0 }
 0x1a4   : > { %v1402_v16 = vmax.f32 %v1323_v13, %v1325_v15  ;;  %v1327_v21 = vpop.f32.mrb[2].mxu0  ;;  %v3754_v15 = vld [vmem:[%s5040_s3 + $0x114] ss:$8 sps:$4 sm:$0xff]  }
 0x1a5   : > { %v1329_v22 = vpop.f32.mrb[3].mxu0 }
 0x1a6   : > { %1418 = vst [vmem:[#allocation2] sm:$0xff] %v1402_v16  ;;  %v1403_v47 = vmax.f32 %v1327_v21, %v1329_v22 }
 0x1a8   : > { %1419 = vst [vmem:[#allocation2 + $0x8] sm:$0xff] %v1403_v47  ;;  %v3752_v47 = vld [vmem:[%s5040_s3 + $0x110] ss:$8 sps:$4 sm:$0xff]  }
 0x1aa   : > { %v1333_v23 = vpop.f32.mrb[4].mxu0 }
 0x1ab   : > { %v1335_v32 = vpop.f32.mrb[5].mxu0 }
 0x1ac   : > { %v1404_v24 = vmax.f32 %v1333_v23, %v1335_v32  ;;  %v1337_v56 = vpop.f32.mrb[6].mxu0  ;;  %v3757_v32 = vld [vmem:[%s5040_s3 + $0x124] ss:$8 sps:$4 sm:$0xff]  }
 0x1ad   : > { %v1339_v25 = vpop.f32.mrb[7].mxu0 }
 0x1ae   : > { %1420 = vst [vmem:[#allocation2 + $0x10] sm:$0xff] %v1404_v24  ;;  %v1405_v17 = vmax.f32 %v1337_v56, %v1339_v25 }
 0x1af   : > { %v1434_v27 = vld [vmem:[#allocation2] ss:$2 sm:$0xff]  ;;  %v1450_v28 = vld [vmem:[#allocation2 + $0x1] ss:$2 sm:$0xff] }
 0x1b0   : > { %v1465_v60 = vmax.f32 %v1434_v27, %v1450_v28  ;;  %1421 = vst [vmem:[#allocation2 + $0x18] sm:$0xff] %v1405_v17  ;;  %v3755_v28 = vld [vmem:[%s5040_s3 + $0x120] ss:$8 sps:$4 sm:$0xff]  }
 0x1b2   : > { %v1343_v49 = vpop.f32.mrb[8].mxu0  ;;  %v1480_v18 = vadd.f32 %v4604_v29, %v1465_v60 }
 0x1b3   : > { %v1345_v63 = vpop.f32.mrb[9].mxu0 }
 0x1b4   : > { %v1406_v30 = vmax.f32 %v1343_v49, %v1345_v63  ;;  %v1347_v34 = vpop.f32.mrb[10].mxu0  ;;  %v1488_v35 = vmax.f32 %v1480_v18, 0.0  ;;  %v3760_v18 = vld [vmem:[%s5040_s3 + $0x134] ss:$8 sps:$4 sm:$0xff]  }
 0x1b5   : > { %v1349_v36 = vpop.f32.mrb[11].mxu0 }
 0x1b6   : > { %1422 = vst [vmem:[#allocation2 + $0x20] sm:$0xff] %v1406_v30  ;;  %v1407_v37 = vmax.f32 %v1347_v34, %v1349_v36  ;;  %1496 = vst [vmem:[#allocation3] sm:$0xff] %v1488_v35 }
 0x1b7   : > { %v1436_v62 = vld [vmem:[#allocation2 + $0x10] ss:$2 sm:$0xff]  ;;  %v1452_v3 = vld [vmem:[#allocation2 + $0x11] ss:$2 sm:$0xff] }
 0x1b8   : > { %v1466_v2 = vmax.f32 %v1436_v62, %v1452_v3  ;;  %1423 = vst [vmem:[#allocation2 + $0x28] sm:$0xff] %v1407_v37  ;;  %v3763_v37 = vld [vmem:[%s5040_s3 + $0x144] ss:$8 sps:$4 sm:$0xff]  }
 0x1ba   : > { %v1353_v39 = vpop.f32.mrb[12].mxu0  ;;  %v1481_v48 = vadd.f32 %v4604_v29, %v1466_v2 }
 0x1bb   : > { %v1355_v6 = vpop.f32.mrb[13].mxu0 }
 0x1bc   : > { %v1408_v40 = vmax.f32 %v1353_v39, %v1355_v6  ;;  %v1357_v41 = vpop.f32.mrb[14].mxu0  ;;  %v1489_v0 = vmax.f32 %v1481_v48, 0.0 }
 0x1bd   : > { %v1359_v33 = vpop.f32.mrb[15].mxu0 }
 0x1be   : > { %1424 = vst [vmem:[#allocation2 + $0x30] sm:$0xff] %v1408_v40  ;;  %v1409_v12 = vmax.f32 %v1357_v41, %v1359_v33  ;;  %1497 = vst [vmem:[#allocation3 + $0x8] sm:$0xff] %v1489_v0  ;;  %v1512_v13 = vpack.c.bf16 %v1489_v0, %v1488_v35  ;;  %v3758_v35 = vld [vmem:[%s5040_s3 + $0x130] ss:$8 sps:$4 sm:$0xff]   ;;  %v3761_v0 = vld [vmem:[%s5040_s3 + $0x140] ss:$8 sps:$4 sm:$0xff]  }
 0x1bf   : > { %v1438_v14 = vld [vmem:[#allocation2 + $0x20] ss:$2 sm:$0xff]  ;;  %v1454_v26 = vld [vmem:[#allocation2 + $0x21] ss:$2 sm:$0xff] }
 0x1c0   : > { %v1467_v45 = vmax.f32 %v1438_v14, %v1454_v26  ;;  %1425 = vst [vmem:[#allocation2 + $0x38] sm:$0xff] %v1409_v12  ;;  %v3766_v26 = vld [vmem:[%s5040_s3 + $0x154] ss:$8 sps:$4 sm:$0xff]  }
 0x1c2   : > { %v1363_v42 = vpop.f32.mrb[16].mxu0  ;;  %v4609_v4 = vadd.f32 %v4604_v29, %v1467_v45 }
 0x1c3   : > { %v1365_v61 = vpop.f32.mrb[17].mxu0 }
 0x1c4   : > { %v1410_v19 = vmax.f32 %v1363_v42, %v1365_v61  ;;  %v1367_v50 = vpop.f32.mrb[18].mxu0  ;;  %v1490_v55 = vmax.f32 %v4609_v4, 0.0  ;;  %v3764_v61 = vld [vmem:[%s5040_s3 + $0x150] ss:$8 sps:$4 sm:$0xff]   ;;  %v3769_v4 = vld [vmem:[%s5040_s3 + $0x164] ss:$8 sps:$4 sm:$0xff]  }
 0x1c5   : > { %v1369_v7 = vpop.f32.mrb[19].mxu0  ;;  %v1516_v38 = vld [vmem:[#allocation3 + $0x1] sm:$0xff] }
 0x1c6   : > { %1426 = vst [vmem:[#allocation2 + $0x40] sm:$0xff] %v1410_v19  ;;  %v1411_v51 = vmax.f32 %v1367_v50, %v1369_v7  ;;  %1498 = vst [vmem:[#allocation3 + $0x10] sm:$0xff] %v1490_v55  ;;  %v3767_v50 = vld [vmem:[%s5040_s3 + $0x160] ss:$8 sps:$4 sm:$0xff]  }
 0x1c7   : > { %v1440_v52 = vld [vmem:[#allocation2 + $0x30] ss:$2 sm:$0xff]  ;;  %v1456_v53 = vld [vmem:[#allocation2 + $0x31] ss:$2 sm:$0xff] }
 0x1c8   : > { %v1468_v54 = vmax.f32 %v1440_v52, %v1456_v53  ;;  %1427 = vst [vmem:[#allocation2 + $0x48] sm:$0xff] %v1411_v51 }
 0x1ca   : > { %v4615_v58 = vadd.f32 %v4604_v29, %v1468_v54  ;;  %v1373_v44 = vpop.f32.mrb[20].mxu0  ;;  %v3770_v54 = vld [vmem:[%s5040_s3 + $0x170] ss:$8 sps:$4 sm:$0xff]  }
 0x1cb   : > { %v1375_v59 = vpop.f32.mrb[21].mxu0 }
 0x1cc   : > { %v1491_v1 = vmax.f32 %v4615_v58, 0.0  ;;  %v1412_v5 = vmax.f32 %v1373_v44, %v1375_v59  ;;  %v1377_v8 = vpop.f32.mrb[22].mxu0  ;;  %v3775_v58 = vld [vmem:[%s5040_s3 + $0x184] ss:$8 sps:$4 sm:$0xff]  }
 0x1cd   : > { %v1379_v9 = vpop.f32.mrb[23].mxu0  ;;  %v1517_v31 = vld [vmem:[#allocation3 + $0x9] sm:$0xff] }
 0x1ce   : > { %1499 = vst [vmem:[#allocation3 + $0x18] sm:$0xff] %v1491_v1  ;;  %1428 = vst [vmem:[#allocation2 + $0x50] sm:$0xff] %v1412_v5  ;;  %v1413_v57 = vmax.f32 %v1377_v8, %v1379_v9  ;;  %v1524_v20 = vpack.c.bf16 %v1517_v31, %v1516_v38  ;;  %v1513_v14 = vpack.c.bf16 %v1491_v1, %v1490_v55  ;;  %v3772_v55 = vld [vmem:[%s5040_s3 + $0x174] ss:$8 sps:$4 sm:$0xff]   ;;  %v3776_v38 = vld [vmem:[%s5040_s3 + $0x190] ss:$8 sps:$4 sm:$0xff]  }
 0x1cf   : > { %v1442_v10 = vld [vmem:[#allocation2 + $0x40] ss:$2 sm:$0xff]  ;;  %v1458_v11 = vld [vmem:[#allocation2 + $0x41] ss:$2 sm:$0xff]  ;;  %v3778_v9 = vld [vmem:[%s5040_s3 + $0x194] ss:$8 sps:$4 sm:$0xff]  }
 0x1d0   : > { %v1469_v16 = vmax.f32 %v1442_v10, %v1458_v11  ;;  %1429 = vst [vmem:[#allocation2 + $0x58] sm:$0xff] %v1413_v57  ;;  %2076 = vmatprep.mubr.bf16.mxu1 %v1524_v20  ;;  %v3781_v31 = vld [vmem:[%s5040_s3 + $0x1a4] ss:$8 sps:$4 sm:$0xff]  }
 0x1d1   : > { %2077 = vmatmul.mubr.bf16.vlgmr.msra.gmra.mrb[0].mxu1 %v1512_v13  ;;  %v1541_v57 = vld [vmem:[#allocation3 + $0xb] sm:$0xff] }
 0x1d2   : > { %v4627_v21 = vadd.f32 %v4604_v29, %v1469_v16  ;;  %2118 = vmatpush1.bf16.msra.mxu1 %v3749_v46  ;;  %v1383_v22 = vpop.f32.mrb[24].mxu0  ;;  %v3779_v13 = vld [vmem:[%s5040_s3 + $0x1a0] ss:$8 sps:$4 sm:$0xff]  }
 0x1d3   : > { %v1385_v23 = vpop.f32.mrb[25].mxu0  ;;  %2119 = vmatprep.subr.bf16.mxu1 %v3754_v15  ;;  %v1540_v16 = vld [vmem:[#allocation3 + $0x3] sm:$0xff] }
 0x1d4   : > { %v1492_v24 = vmax.f32 %v4627_v21, 0.0  ;;  %v1414_v56 = vmax.f32 %v1383_v22, %v1385_v23  ;;  %v1387_v25 = vpop.f32.mrb[26].mxu0  ;;  %v3784_v21 = vld [vmem:[%s5040_s3 + $0x1b4] ss:$8 sps:$4 sm:$0xff]   ;;  %v1548_v22 = vpack.c.bf16 %v1541_v57, %v1540_v16  ;;  %v3787_v23 = vld [vmem:[%s5040_s3 + $0x1c4] ss:$8 sps:$4 sm:$0xff]  }
 0x1d5   : > { %v1389_v17 = vpop.f32.mrb[27].mxu0  ;;  %v1518_v48 = vld [vmem:[#allocation3 + $0x11] sm:$0xff]  ;;  %v3823_v16 = vld [vmem:[%s5042_s5 + $0x100] sm:$0xff]  }
 0x1d6   : > { %1500 = vst [vmem:[#allocation3 + $0x20] sm:$0xff] %v1492_v24  ;;  %1430 = vst [vmem:[#allocation2 + $0x60] sm:$0xff] %v1414_v56  ;;  %v1415_v27 = vmax.f32 %v1387_v25, %v1389_v17  ;;  %2120 = vmatpush1.bf16.msra.mxu1 %v3752_v47  ;;  %v3782_v47 = vld [vmem:[%s5040_s3 + $0x1b0] ss:$8 sps:$4 sm:$0xff]   ;;  %v3793_v25 = vld [vmem:[%s5040_s3 + $0x1e4] ss:$8 sps:$4 sm:$0xff]  }
 0x1d7   : > { %v1444_v60 = vld [vmem:[#allocation2 + $0x50] ss:$2 sm:$0xff]  ;;  %v1460_v49 = vld [vmem:[#allocation2 + $0x51] ss:$2 sm:$0xff]  ;;  %2121 = vmatprep.subr.bf16.mxu1 %v3757_v32  ;;  %v3785_v32 = vld [vmem:[%s5040_s3 + $0x1c0] ss:$8 sps:$4 sm:$0xff]  }
 0x1d8   : > { %v1470_v63 = vmax.f32 %v1444_v60, %v1460_v49  ;;  %1431 = vst [vmem:[#allocation2 + $0x68] sm:$0xff] %v1415_v27  ;;  %v3788_v56 = vld [vmem:[%s5040_s3 + $0x1d0] ss:$8 sps:$4 sm:$0xff]   ;;  %v3791_v17 = vld [vmem:[%s5040_s3 + $0x1e0] ss:$8 sps:$4 sm:$0xff]  }
 0x1d9   : > { %v3796_v27 = vld [vmem:[%s5040_s3 + $0x1f4] ss:$8 sps:$4 sm:$0xff]   ;;  %v3799_v60 = vld [vmem:[%s5040_s3 + $0x204] ss:$8 sps:$4 sm:$0xff]  }
 0x1da   : > { %v1485_v30 = vadd.f32 %v4604_v29, %v1470_v63  ;;  %2122 = vmatpush1.bf16.msra.mxu1 %v3755_v28  ;;  %v1393_v34 = vpop.f32.mrb[28].mxu0  ;;  %v3794_v28 = vld [vmem:[%s5040_s3 + $0x1f0] ss:$8 sps:$4 sm:$0xff]   ;;  %v1528_v63 = vld [vmem:[#allocation3 + $0x2] sm:$0xff] }
 0x1db   : > { %v1395_v36 = vpop.f32.mrb[29].mxu0  ;;  %2123 = vmatprep.subr.bf16.mxu1 %v3760_v18  ;;  %v1529_v49 = vld [vmem:[#allocation3 + $0xa] sm:$0xff] }
 0x1dc   : > { %v1493_v62 = vmax.f32 %v1485_v30, 0.0  ;;  %v1416_v3 = vmax.f32 %v1393_v34, %v1395_v36  ;;  %v1397_v2 = vpop.f32.mrb[30].mxu0  ;;  %v3797_v30 = vld [vmem:[%s5040_s3 + $0x200] ss:$8 sps:$4 sm:$0xff]   ;;  %v1536_v34 = vpack.c.bf16 %v1529_v49, %v1528_v63  ;;  %v3802_v36 = vld [vmem:[%s5040_s3 + $0x214] ss:$8 sps:$4 sm:$0xff]  }
 0x1dd   : > { %v1399_v39 = vpop.f32.mrb[31].mxu0  ;;  %v1519_v6 = vld [vmem:[#allocation3 + $0x19] sm:$0xff]  ;;  %v3836_v49 = vld [vmem:[%s5042_s5 + $0x68] sm:$0xff]  }
 0x1de   : > { %1501 = vst [vmem:[#allocation3 + $0x28] sm:$0xff] %v1493_v62  ;;  %1432 = vst [vmem:[#allocation2 + $0x70] sm:$0xff] %v1416_v3  ;;  %v1417_v40 = vmax.f32 %v1397_v2, %v1399_v39  ;;  %2124 = vmatpush1.bf16.msra.mxu1 %v3758_v35  ;;  %v1525_v41 = vpack.c.bf16 %v1519_v6, %v1518_v48  ;;  %v1514_v8 = vpack.c.bf16 %v1493_v62, %v1492_v24  ;;  %v3790_v24 = vld [vmem:[%s5040_s3 + $0x1d4] ss:$8 sps:$4 sm:$0xff]   ;;  %v3800_v62 = vld [vmem:[%s5040_s3 + $0x210] ss:$8 sps:$4 sm:$0xff]  }
 0x1df   : > { %v1446_v33 = vld [vmem:[#allocation2 + $0x60] ss:$2 sm:$0xff]  ;;  %v1462_v12 = vld [vmem:[#allocation2 + $0x61] ss:$2 sm:$0xff]  ;;  %2125 = vmatprep.subr.bf16.mxu1 %v3763_v37  ;;  %v1542_v35 = vld [vmem:[#allocation3 + $0x13] sm:$0xff] }
 0x1e0   : > { %v1471_v45 = vmax.f32 %v1446_v33, %v1462_v12  ;;  %1433 = vst [vmem:[#allocation2 + $0x78] sm:$0xf] %v1417_v40  ;;  %2086 = vmatprep.mubr.bf16.mxu1 %v1525_v41  ;;  %v1543_v18 = vld [vmem:[#allocation3 + $0x1b] sm:$0xff]  ;;  %v3805_v3 = vld [vmem:[%s5040_s3 + $0x224] ss:$8 sps:$4 sm:$0xff]   ;;  %v1530_v48 = vld [vmem:[#allocation3 + $0x12] sm:$0xff] }
 0x1e1   : > { %2087 = vmatmul.mubr.bf16.gmra.mrb[4].mxu1 %v1513_v14  ;;  %v1549_v37 = vpack.c.bf16 %v1543_v18, %v1542_v35  ;;  %v1531_v2 = vld [vmem:[#allocation3 + $0x1a] sm:$0xff]  ;;  %v3811_v14 = vld [vmem:[%s5040_s3 + $0x244] ss:$8 sps:$4 sm:$0xff]   ;;  %v3841_v35 = vld [vmem:[%s5042_s5 + $0x130] sm:$0xff]  }
 0x1e2   : > { %v1486_v42 = vadd.f32 %v4604_v29, %v1471_v45  ;;  %2126 = vmatpush1.bf16.msra.mxu1 %v3761_v0  ;;  %v3803_v6 = vld [vmem:[%s5040_s3 + $0x220] ss:$8 sps:$4 sm:$0xff]   ;;  %v1537_v40 = vpack.c.bf16 %v1531_v2, %v1530_v48  ;;  %v3808_v0 = vld [vmem:[%s5040_s3 + $0x234] ss:$8 sps:$4 sm:$0xff]   ;;  %v3806_v12 = vld [vmem:[%s5040_s3 + $0x230] ss:$8 sps:$4 sm:$0xff]  }
 0x1e3   : > { %2127 = vmatprep.subr.bf16.mxu1 %v3766_v26  ;;  %v3837_v18 = vld [vmem:[%s5042_s5 + $0x28] sm:$0xff]  }
 0x1e4   : > { %v1494_v19 = vmax.f32 %v1486_v42, 0.0  ;;  %v3838_v63 = vld [vmem:[%s5042_s5 + $0x128] sm:$0xff]  }
 0x1e5   : > { %v1520_v59 = vld [vmem:[#allocation3 + $0x21] sm:$0xff] }
 0x1e6   : > { %1502 = vst [vmem:[#allocation3 + $0x30] sm:$0xff] %v1494_v19  ;;  %2128 = vmatpush1.bf16.msra.mxu1 %v3764_v61  ;;  %v1544_v41 = vld [vmem:[#allocation3 + $0x23] sm:$0xff] }
 0x1e7   : > { %v1448_v7 = vld [vmem:[#allocation2 + $0x70] ss:$2 sm:$0x3f]  ;;  %v1464_v51 = vld [vmem:[#allocation2 + $0x71] ss:$2 sm:$0x3f]  ;;  %2129 = vmatprep.subr.bf16.mxu1 %v3769_v4 }
 0x1e8   : > { %v1472_v52 = vmax.f32 %v1448_v7, %v1464_v51  ;;  %v1532_v61 = vld [vmem:[#allocation3 + $0x22] sm:$0xff]  ;;  %v3812_v7 = vld [vmem:[%s5040_s3 + $0x250] ss:$8 sps:$4 sm:$0xff]  }
 0x1e9   : > { %v3809_v4 = vld [vmem:[%s5040_s3 + $0x240] ss:$8 sps:$4 sm:$0xff]   ;;  %v3817_v51 = vld [vmem:[%s5040_s3 + $0x264] ss:$8 sps:$4 sm:$0xff]  }
 0x1ea   : > { %v1487_v53 = vadd.f32 %v4604_v29, %v1472_v52  ;;  %2130 = vmatpush1.bf16.msra.mxu1 %v3767_v50  ;;  %v3773_v29 = vld [vmem:[%s5040_s3 + $0x180] ss:$8 sps:$4 sm:$0xff]   ;;  %v3814_v50 = vld [vmem:[%s5040_s3 + $0x254] ss:$8 sps:$4 sm:$0xff]  }
 0x1eb   : > { %2131 = vmatprep.subr.bf16.mxu1 %v3772_v55  ;;  %v1556_v57 = vld [vmem:[#allocation3 + $0x24] sm:$0xff] }
 0x1ec   : > { %v1495_v44 = vmax.f32 %v1487_v53, 0.0 }
 0x1ed   : > { %v1521_v1 = vld [vmem:[#allocation3 + $0x29] sm:$0xff] }
 0x1ee   : > { %1503 = vst [vmem:[#allocation3 + $0x38] sm:$0x3f] %v1495_v44  ;;  %2132 = vmatpush1.bf16.msra.mxu1 %v3770_v54  ;;  %v1526_v5 = vpack.c.bf16 %v1521_v1, %v1520_v59  ;;  %v1545_v39 = vld [vmem:[#allocation3 + $0x2b] sm:$0xff]  ;;  %v3820_v44 = vld [vmem:[%s5040_s3 + $0x274] ss:$8 sps:$4 sm:$0xff]  }
 0x1ef   : > { %2133 = vmatprep.subr.bf16.mxu1 %v3775_v58  ;;  %v1550_v33 = vpack.c.bf16 %v1545_v39, %v1544_v41  ;;  %v1533_v26 = vld [vmem:[#allocation3 + $0x2a] sm:$0xff] }
 0x1f0   : > { %2096 = vmatprep.mubr.bf16.mxu1 %v1526_v5  ;;  %v3815_v54 = vld [vmem:[%s5040_s3 + $0x260] ss:$8 sps:$4 sm:$0xff]   ;;  %v3818_v59 = vld [vmem:[%s5040_s3 + $0x270] ss:$8 sps:$4 sm:$0xff]  }
 0x1f1   : > { %2097 = vmatmul.mubr.bf16.gmra.mrb[8].mxu1 %v1514_v8  ;;  %v1553_v1 = vld [vmem:[#allocation3 + $0xc] sm:$0xff]  ;;  %v1552_v5 = vld [vmem:[#allocation3 + $0x4] sm:$0xff]  ;;  %v1555_v8 = vld [vmem:[#allocation3 + $0x1c] sm:$0xff] }
 0x1f2   : > { %2134 = vmatpush1.bf16.msra.mxu1 %v3773_v29  ;;  %v1560_v29 = vpack.c.bf16 %v1553_v1, %v1552_v5 }
 0x1f3   : > { %2135 = vmatprep.subr.bf16.mxu1 %v3778_v9  ;;  %v1554_v9 = vld [vmem:[#allocation3 + $0x14] sm:$0xff] }
 0x1f5   : > { %v1522_v20 = vld [vmem:[#allocation3 + $0x31] sm:$0xff]  ;;  %v1523_v46 = vld [vmem:[#allocation3 + $0x39] sm:$0x3]  ;;  %v1547_v42 = vld [vmem:[#allocation3 + $0x3b] sm:$0x3] }
 0x1f6   : > { %v1511_v10 = vld [vmem:[#allocation3 + $0x38] sm:$0x3]  ;;  %2136 = vmatpush1.bf16.msra.mxu1 %v3776_v38  ;;  %v1527_v11 = vpack.c.bf16 %v1523_v46, %v1522_v20  ;;  %v1535_v53 = vld [vmem:[#allocation3 + $0x3a] sm:$0x3]  ;;  %v1561_v38 = vpack.c.bf16 %v1555_v8, %v1554_v9 }
 0x1f7   : > { %v1515_v15 = vpack.c.bf16 %v1511_v10, %v1494_v19  ;;  %2137 = vmatprep.subr.bf16.mxu1 %v3781_v31  ;;  %v1546_v45 = vld [vmem:[#allocation3 + $0x33] sm:$0xff]  ;;  %v1538_v19 = vpack.c.bf16 %v1533_v26, %v1532_v61  ;;  %v1559_v10 = vld [vmem:[#allocation3 + $0x3c] sm:$0x3] }
 0x1f8   : > { %2106 = vmatprep.mubr.bf16.mxu1 %v1527_v11  ;;  %v1551_v55 = vpack.c.bf16 %v1547_v42, %v1546_v45  ;;  %v1534_v52 = vld [vmem:[#allocation3 + $0x32] sm:$0xff] }
 0x1f9   : > { %2107 = vmatmul.mubr.bf16.gmra.mrb[12].mxu1 %v1515_v15  ;;  %v1539_v58 = vpack.c.bf16 %v1535_v53, %v1534_v52  ;;  %v1557_v31 = vld [vmem:[#allocation3 + $0x2c] sm:$0xff]  ;;  %v1558_v46 = vld [vmem:[#allocation3 + $0x34] sm:$0xff]  ;;  %v3822_v15 = vld [vmem:[%s5042_s5] sm:$0xff]  }
 0x1fa   : > { %2138 = vmatpush1.bf16.msra.mxu1 %v3779_v13  ;;  %2149 = vmatprep.mubr.bf16.mxu1 %v1548_v22  ;;  %v1562_v20 = vpack.c.bf16 %v1557_v31, %v1556_v57  ;;  %v1563_v11 = vpack.c.bf16 %v1559_v10, %v1558_v46  ;;  %v3821_v13 = vld [vmem:[%s5042_s5 + $0x40] sm:$0xff]   ;;  %v3825_v22 = vld [vmem:[%s5042_s5 + $0x8] sm:$0xff]  }
 0x1fb   : > { %2139 = vmatprep.subr.bf16.mxu1 %v3784_v21  ;;  %v3942_v21 = vmov 0.0  }
 0x1fc   : > { %3383 = vmatprep.subr.bf16.mxu0 %v3942_v21  ;;  %3399 = vmatprep.mubr.msk.bf16.mxu0 %vm3943_vm4, %v3942_v21 }
 0x1fd   : > { %3384 = vmatpush3.bf16.msra.mxu0 %v3823_v16 }
 0x1fe   : > { %2140 = vmatpush1.bf16.msra.mxu1 %v3782_v47  ;;  %3385 = vmatprep.subr.bf16.mxu0 %v3942_v21  ;;  %v3826_v47 = vld [vmem:[%s5042_s5 + $0x108] sm:$0xff]  }
 0x1ff   : > { %2141 = vmatprep.subr.bf16.mxu1 %v3787_v23  ;;  %v3827_v23 = vld [vmem:[%s5042_s5 + $0x50] sm:$0xff]  }
 0x201   : > { %3386 = vmatpush3.bf16.msra.mxu0 %v3826_v47 }
 0x202   : > { %2142 = vmatpush1.bf16.msra.mxu1 %v3785_v32  ;;  %3387 = vmatprep.subr.bf16.mxu0 %v3942_v21  ;;  %v3828_v32 = vld [vmem:[%s5042_s5 + $0x10] sm:$0xff]  }
 0x203   : > { %2143 = vmatprep.subr.bf16.mxu1 %v3790_v24  ;;  %v3829_v24 = vld [vmem:[%s5042_s5 + $0x110] sm:$0xff]  }
 0x205   : > { %3388 = vmatpush3.bf16.msra.mxu0 %v3829_v24 }
 0x206   : > { %2144 = vmatpush1.bf16.msra.mxu1 %v3788_v56  ;;  %v3830_v56 = vld [vmem:[%s5042_s5 + $0x58] sm:$0xff]   ;;  %3389 = vmatprep.subr.bf16.mxu0 %v3942_v21 }
 0x207   : > { %2145 = vmatprep.subr.bf16.mxu1 %v3793_v25  ;;  %v3831_v25 = vld [vmem:[%s5042_s5 + $0x18] sm:$0xff]  }
 0x20a   : > { %2146 = vmatpush1.bf16.msra.mxu1 %v3791_v17  ;;  %v3832_v17 = vld [vmem:[%s5042_s5 + $0x118] sm:$0xff]  }
 0x20b   : > { %2147 = vmatprep.subr.bf16.mxu1 %v3796_v27  ;;  %3390 = vmatpush3.bf16.msra.mxu0 %v3832_v17  ;;  %v3833_v27 = vld [vmem:[%s5042_s5 + $0x60] sm:$0xff]  }
 0x20c   : > { %3391 = vmatprep.subr.bf16.mxu0 %v3942_v21 }
 0x20e   : > { %2148 = vmatpush1.bf16.msra.mxu1 %v3794_v28  ;;  %v3834_v28 = vld [vmem:[%s5042_s5 + $0x20] sm:$0xff]  }
 0x20f   : > { %2190 = vmatprep.subr.bf16.mxu1 %v3799_v60  ;;  %v3835_v60 = vld [vmem:[%s5042_s5 + $0x120] sm:$0xff]  }
 0x210   : > { %3392 = vmatpush3.bf16.msra.mxu0 %v3835_v60 }
 0x211   : > { %2150 = vmatmul.mubr.bf16.vlgmr.msra.gmra.mrb[0].mxu1 %v1536_v34  ;;  %3393 = vmatprep.subr.bf16.mxu0 %v3942_v21  ;;  %v3840_v34 = vld [vmem:[%s5042_s5 + $0x30] sm:$0xff]  }
 0x212   : > { %2159 = vmatprep.mubr.bf16.mxu1 %v1549_v37  ;;  %2191 = vmatpush1.bf16.msra.mxu1 %v3797_v30  ;;  %v3839_v30 = vld [vmem:[%s5042_s5 + $0x70] sm:$0xff]   ;;  %v3843_v37 = vld [vmem:[%s5042_s5 + $0x38] sm:$0xff]  }
 0x213   : > { %2192 = vmatprep.subr.bf16.mxu1 %v3802_v36  ;;  %v3842_v36 = vld [vmem:[%s5042_s5 + $0x78] sm:$0xff]  }
 0x214   : > { %3394 = vmatpush3.bf16.msra.mxu0 %v3838_v63  ;;  %v3848_v63 = vld [vmem:[%s5042_s5 + $0x88] sm:$0xff]  }
 0x215   : > { %3395 = vmatprep.subr.bf16.mxu0 %v3942_v21 }
 0x216   : > { %2193 = vmatpush1.bf16.msra.mxu1 %v3800_v62  ;;  %v3844_v62 = vld [vmem:[%s5042_s5 + $0x138] sm:$0xff]  }
 0x217   : > { %2194 = vmatprep.subr.bf16.mxu1 %v3805_v3  ;;  %v3845_v3 = vld [vmem:[%s5042_s5 + $0xc0] sm:$0xff]  }
 0x218   : > { %3396 = vmatpush3.bf16.msra.mxu0 %v3841_v35  ;;  %v3851_v35 = vld [vmem:[%s5042_s5 + $0xd8] sm:$0xff]  }
 0x219   : > { %2160 = vmatmul.mubr.bf16.gmra.mrb[4].mxu1 %v1537_v40  ;;  %3397 = vmatprep.subr.bf16.mxu0 %v3942_v21 }
 0x21a   : > { %2169 = vmatprep.mubr.bf16.mxu1 %v1550_v33  ;;  %2195 = vmatpush1.bf16.msra.mxu1 %v3803_v6 }
 0x21b   : > { %2196 = vmatprep.subr.bf16.mxu1 %v3808_v0 }
 0x21c   : > { %3398 = vmatpush3.bf16.msra.mxu0 %v3844_v62  ;;  %v3854_v62 = vld [vmem:[%s5042_s5 + $0xa0] sm:$0xff]  }
 0x21d   : > { %3423 = vmatprep.subr.bf16.mxu0 %v3942_v21 }
 0x21e   : > { %2197 = vmatpush1.bf16.msra.mxu1 %v3806_v12 }
 0x21f   : > { %2198 = vmatprep.subr.bf16.mxu1 %v3811_v14 }
 0x221   : > { %2170 = vmatmul.mubr.bf16.gmra.mrb[8].mxu1 %v1538_v19 }
 0x222   : > { %2179 = vmatprep.mubr.bf16.mxu1 %v1551_v55  ;;  %2199 = vmatpush1.bf16.msra.mxu1 %v3809_v4  ;;  %v3247_v4 = vld [vmem:[%s5041_s4] ss:$0 sm:$0xff] }
 0x223   : > { %2200 = vmatprep.subr.bf16.mxu1 %v3814_v50 }
 0x226   : > { %2201 = vmatpush1.bf16.msra.mxu1 %v3812_v7 }
 0x227   : > { %2202 = vmatprep.subr.bf16.mxu1 %v3817_v51 }
 0x229   : > { %2180 = vmatmul.mubr.bf16.gmra.mrb[12].mxu1 %v1539_v58 }
 0x22a   : > { %2203 = vmatpush1.bf16.msra.mxu1 %v3815_v54  ;;  %2222 = vmatprep.mubr.bf16.mxu1 %v3941_v43 }
 0x22b   : > { %2204 = vmatprep.subr.bf16.mxu1 %v3820_v44 }
 0x22e   : > { %2205 = vmatpush1.bf16.msra.mxu1 %v3818_v59 }
 0x22f   : > { %3312 = vmatprep.subr.bf16.mxu1 %v3821_v13 }
 0x231   : > { %2223 = vmatmul.mubr.bf16.vlgmr.msra.gmra.mrb[0].mxu1 %v1560_v29 }
 0x232   : > { %2232 = vmatprep.mubr.bf16.mxu1 %v3941_v43  ;;  %3313 = vmatpush3.bf16.msra.mxu1 %v3822_v15 }
 0x239   : > { %2233 = vmatmul.mubr.bf16.gmra.mrb[4].mxu1 %v1561_v38 }
 0x23a   : > { %2242 = vmatprep.mubr.bf16.mxu1 %v3941_v43 }
 0x241   : > { %2243 = vmatmul.mubr.bf16.gmra.mrb[8].mxu1 %v1562_v20 }
 0x242   : > { %2252 = vmatprep.mubr.bf16.mxu1 %v3941_v43  ;;  %v3824_v43 = vld [vmem:[%s5042_s5 + $0x48] sm:$0xff]  }
 0x243   : > { %3314 = vmatprep.subr.bf16.mxu1 %v3824_v43 }
 0x244   : > { %3315 = vmatpush3.bf16.msra.mxu1 %v3825_v22 }
 0x245   : > { %3316 = vmatprep.subr.bf16.mxu1 %v3827_v23 }
 0x248   : > { %3317 = vmatpush3.bf16.msra.mxu1 %v3828_v32  ;;  %v3846_v32 = vld [vmem:[%s5042_s5 + $0x80] sm:$0xff]  }
 0x249   : > { %2253 = vmatmul.mubr.bf16.gmra.mrb[12].mxu1 %v1563_v11  ;;  %3318 = vmatprep.subr.bf16.mxu1 %v3830_v56 }
 0x24c   : > { %3319 = vmatpush3.bf16.msra.mxu1 %v3831_v25 }
 0x24d   : > { %3320 = vmatprep.subr.bf16.mxu1 %v3833_v27 }
 0x250   : > { %3321 = vmatpush3.bf16.msra.mxu1 %v3834_v28 }
 0x251   : > { %3322 = vmatprep.subr.bf16.mxu1 %v3836_v49  ;;  %v3847_v49 = vld [vmem:[%s5042_s5 + $0xc8] sm:$0xff]  }
 0x254   : > { %3323 = vmatpush3.bf16.msra.mxu1 %v3837_v18 }
 0x255   : > { %3324 = vmatprep.subr.bf16.mxu1 %v3839_v30  ;;  %v3849_v30 = vld [vmem:[%s5042_s5 + $0xd0] sm:$0xff]  }
 0x258   : > { %3325 = vmatpush3.bf16.msra.mxu1 %v3840_v34  ;;  %v3850_v34 = vld [vmem:[%s5042_s5 + $0x90] sm:$0xff]  }
 0x259   : > { %3326 = vmatprep.subr.bf16.mxu1 %v3842_v36  ;;  %v3852_v36 = vld [vmem:[%s5042_s5 + $0x98] sm:$0xff]  }
 0x25c   : > { %3327 = vmatpush3.bf16.msra.mxu1 %v3843_v37  ;;  %v3853_v37 = vld [vmem:[%s5042_s5 + $0xe0] sm:$0xff]  }
 0x25d   : > { %3334 = vmatprep.subr.bf16.mxu1 %v3845_v3  ;;  %v3855_v3 = vld [vmem:[%s5042_s5 + $0xe8] sm:$0xff]  }
 0x304   : > { %v2224_v2 = vpop.f32.mrb[0].mxu1 }
 0x305   : > { %v2226_v39 = vpop.f32.mrb[1].mxu1 }
 0x306   : > { %v2263_v48 = vmax.f32 %v2224_v2, %v2226_v39  ;;  %v2228_v6 = vpop.f32.mrb[2].mxu1  ;;  %v3856_v2 = vld [vmem:[%s5042_s5 + $0xa8] sm:$0xff]   ;;  %v3857_v39 = vld [vmem:[%s5042_s5 + $0xf0] sm:$0xff]  }
 0x307   : > { %v2230_v40 = vpop.f32.mrb[3].mxu1 }
 0x308   : > { %2271 = vst [vmem:[#allocation4] sm:$0xff] %v2263_v48  ;;  %v2264_v41 = vmax.f32 %v2228_v6, %v2230_v40  ;;  %v3858_v48 = vld [vmem:[%s5042_s5 + $0xb0] sm:$0xff]   ;;  %v3859_v6 = vld [vmem:[%s5042_s5 + $0xf8] sm:$0xff]  }
 0x309   : > { %v3860_v40 = vld [vmem:[%s5042_s5 + $0xb8] sm:$0xff]  }
 0x30a   : > { %2272 = vst [vmem:[#allocation4 + $0x8] sm:$0xff] %v2264_v41 }
 0x30c   : > { %v2234_v0 = vpop.f32.mrb[4].mxu1 }
 0x30d   : > { %v2236_v33 = vpop.f32.mrb[5].mxu1 }
 0x30e   : > { %v2265_v12 = vmax.f32 %v2234_v0, %v2236_v33  ;;  %v2238_v14 = vpop.f32.mrb[6].mxu1  ;;  %v3861_v33 = vld [vmem:[%s5044_s7] sm:$0xff]  }
 0x30f   : > { %v2240_v26 = vpop.f32.mrb[7].mxu1 }
 0x310   : > { %2273 = vst [vmem:[#allocation4 + $0x10] sm:$0xff] %v2265_v12  ;;  %v2266_v45 = vmax.f32 %v2238_v14, %v2240_v26  ;;  %v3862_v12 = vld [vmem:[%s5044_s7 + $0x8] sm:$0xff]   ;;  %v3863_v14 = vld [vmem:[%s5044_s7 + $0x10] sm:$0xff]   ;;  %v3864_v26 = vld [vmem:[%s5044_s7 + $0x18] sm:$0xff]  }
 0x311   : > { %v2279_v42 = vld [vmem:[#allocation4] ss:$2 sm:$0xff]  ;;  %v2287_v61 = vld [vmem:[#allocation4 + $0x1] ss:$2 sm:$0xff] }
 0x312   : > { %v2294_v19 = vmax.f32 %v2279_v42, %v2287_v61  ;;  %2274 = vst [vmem:[#allocation4 + $0x18] sm:$0xff] %v2266_v45  ;;  %v3865_v45 = vld [vmem:[%s5044_s7 + $0x20] sm:$0xff]   ;;  %v3866_v42 = vld [vmem:[%s5044_s7 + $0x28] sm:$0xff]   ;;  %v3867_v61 = vld [vmem:[%s5044_s7 + $0x30] sm:$0xff]  }
 0x314   : > { %v2305_v50 = vadd.f32 %v3247_v4, %v2294_v19  ;;  %v2244_v55 = vpop.f32.mrb[8].mxu1  ;;  %v3869_v19 = vld [vmem:[%s5046_s9] sm:$0xff]  }
 0x315   : > { %v2246_v7 = vpop.f32.mrb[9].mxu1 }
 0x316   : > { %v2309_v51 = vmax.f32 %v2305_v50, 0.0  ;;  %v2267_v52 = vmax.f32 %v2244_v55, %v2246_v7  ;;  %v2248_v53 = vpop.f32.mrb[10].mxu1  ;;  %v3870_v50 = vld [vmem:[%s5046_s9 + $0x8] sm:$0xff]   ;;  %v3871_v55 = vld [vmem:[%s5046_s9 + $0x10] sm:$0xff]   ;;  %v3872_v7 = vld [vmem:[%s5046_s9 + $0x18] sm:$0xff]  }
 0x317   : > { %v2250_v54 = vpop.f32.mrb[11].mxu1 }
 0x318   : > { %2313 = vst [vmem:[#allocation5] sm:$0xff] %v2309_v51  ;;  %2275 = vst [vmem:[#allocation4 + $0x20] sm:$0xff] %v2267_v52  ;;  %v2268_v58 = vmax.f32 %v2248_v53, %v2250_v54  ;;  %v3873_v51 = vld [vmem:[%s5046_s9 + $0x20] sm:$0xff]   ;;  %v3874_v52 = vld [vmem:[%s5046_s9 + $0x28] sm:$0xff]  }
 0x319   : > { %v2281_v44 = vld [vmem:[#allocation4 + $0x10] ss:$2 sm:$0xff]  ;;  %v2289_v59 = vld [vmem:[#allocation4 + $0x11] ss:$2 sm:$0xff] }
 0x31a   : > { %v2295_v1 = vmax.f32 %v2281_v44, %v2289_v59  ;;  %2276 = vst [vmem:[#allocation4 + $0x28] sm:$0xff] %v2268_v58 }
 0x31c   : > { %v2306_v5 = vadd.f32 %v3247_v4, %v2295_v1  ;;  %v2254_v29 = vpop.f32.mrb[12].mxu1 }
 0x31d   : > { %v2256_v8 = vpop.f32.mrb[13].mxu1 }
 0x31e   : > { %v2310_v9 = vmax.f32 %v2306_v5, 0.0  ;;  %v2269_v38 = vmax.f32 %v2254_v29, %v2256_v8  ;;  %v2258_v31 = vpop.f32.mrb[14].mxu1 }
 0x31f   : > { %v2260_v57 = vpop.f32.mrb[15].mxu1 }
 0x320   : > { %2314 = vst [vmem:[#allocation5 + $0x8] sm:$0xff] %v2310_v9  ;;  %2277 = vst [vmem:[#allocation4 + $0x30] sm:$0xff] %v2269_v38  ;;  %v2270_v20 = vmax.f32 %v2258_v31, %v2260_v57  ;;  %v3248_v9 = vld [vmem:[%s5043_s6] ss:$0 sm:$0xff] }
 0x321   : > { %v2283_v46 = vld [vmem:[#allocation4 + $0x20] ss:$2 sm:$0xff]  ;;  %v2291_v10 = vld [vmem:[#allocation4 + $0x21] ss:$2 sm:$0xff] }
 0x322   : > { %v2296_v11 = vmax.f32 %v2283_v46, %v2291_v10  ;;  %2278 = vst [vmem:[#allocation4 + $0x38] sm:$0x3] %v2270_v20 }
 0x324   : > { %v2307_v13 = vadd.f32 %v3247_v4, %v2296_v11 }
 0x326   : > { %v2311_v15 = vmax.f32 %v2307_v13, 0.0 }
 0x328   : > { %2315 = vst [vmem:[#allocation5 + $0x10] sm:$0xff] %v2311_v15 }
 0x329   : > { %v2285_v16 = vld [vmem:[#allocation4 + $0x30] ss:$2 sm:$0x1f]  ;;  %v2293_v43 = vld [vmem:[#allocation4 + $0x31] ss:$2 sm:$0x1f] }
 0x32a   : > { %v2297_v22 = vmax.f32 %v2285_v16, %v2293_v43  ;;  %v3875_v43 = vld [vmem:[%s5046_s9 + $0x30] sm:$0xff]  }
 0x32c   : > { %v2308_v47 = vadd.f32 %v3247_v4, %v2297_v22  ;;  %v3868_v4 = vld [vmem:[%s5044_s7 + $0x38] sm:$0xff]  }
 0x32d   : > { %v3876_v22 = vld [vmem:[%s5046_s9 + $0x38] sm:$0xff]  }
 0x32e   : > { %v2312_v23 = vmax.f32 %v2308_v47, 0.0  ;;  %v3289_v47 = vld [vmem:[%s5045_s8] ss:$0 sm:$0xff] }
 0x330   : > { %2316 = vst [vmem:[#allocation5 + $0x18] sm:$0x1f] %v2312_v23 }
 0x337   : > { %v2320_v24 = vld [vmem:[#allocation5 + $0x1] ss:$8 sm:$0xf]  ;;  %v2329_v56 = vld [vmem:[#allocation5 + $0x4] ss:$8 sm:$0xf] }
 0x338   : > { %v2321_v25 = vpack.c.bf16 %v2320_v24, %v2320_v24  ;;  %v2330_v17 = vpack.c.bf16 %v2329_v56, %v2329_v56  ;;  %v2317_v27 = vld [vmem:[#allocation5] ss:$8 sm:$0xf]  ;;  %v2326_v28 = vld [vmem:[#allocation5 + $0x3] ss:$8 sm:$0xf] }
 0x339   : > { %v2318_v60 = vpack.c.bf16 %v2317_v27, %v2317_v27  ;;  %v2327_v18 = vpack.c.bf16 %v2326_v28, %v2326_v28  ;;  %v2323_v41 = vld [vmem:[#allocation5 + $0x2] ss:$8 sm:$0xf] }
 0x33a   : > { %2690 = vmatprep.mubr.bf16.mxu1 %v2321_v25  ;;  %3400 = vmatmul.mubr.bf16.vlgmr.msra.gmra.mrb[32].mxu0 %v2330_v17  ;;  %v2324_v0 = vpack.c.bf16 %v2323_v41, %v2323_v41 }
 0x33b   : > { %2691 = vmatmul.mubr.bf16.vlgmr.msra.gmra.mrb[16].mxu1 %v2318_v60  ;;  %3439 = vmatprep.mubr.msk.bf16.mxu0 %vm3943_vm4, %v3942_v21 }
 0x33c   : > { %3335 = vmatpush3.bf16.msra.mxu1 %v3846_v32  ;;  %2730 = vmatprep.mubr.bf16.mxu1 %v2327_v18 }
 0x33d   : > { %3336 = vmatprep.subr.bf16.mxu1 %v3847_v49  ;;  %3424 = vmatpush3.bf16.msra.mxu0 %v3869_v19 }
 0x33e   : > { %3425 = vmatprep.subr.bf16.mxu0 %v3942_v21 }
 0x340   : > { %3337 = vmatpush3.bf16.msra.mxu1 %v3848_v63 }
 0x341   : > { %3338 = vmatprep.subr.bf16.mxu1 %v3849_v30  ;;  %3426 = vmatpush3.bf16.msra.mxu0 %v3870_v50 }
 0x342   : > { %3427 = vmatprep.subr.bf16.mxu0 %v3942_v21 }
 0x344   : > { %3339 = vmatpush3.bf16.msra.mxu1 %v3850_v34 }
 0x345   : > { %3340 = vmatprep.subr.bf16.mxu1 %v3851_v35  ;;  %3428 = vmatpush3.bf16.msra.mxu0 %v3871_v55 }
 0x346   : > { %3429 = vmatprep.subr.bf16.mxu0 %v3942_v21 }
 0x348   : > { %3341 = vmatpush3.bf16.msra.mxu1 %v3852_v36 }
 0x349   : > { %3342 = vmatprep.subr.bf16.mxu1 %v3853_v37  ;;  %3430 = vmatpush3.bf16.msra.mxu0 %v3872_v7 }
 0x34a   : > { %3431 = vmatprep.subr.bf16.mxu0 %v3942_v21 }
 0x34c   : > { %3343 = vmatpush3.bf16.msra.mxu1 %v3854_v62 }
 0x34d   : > { %3344 = vmatprep.subr.bf16.mxu1 %v3855_v3  ;;  %3432 = vmatpush3.bf16.msra.mxu0 %v3873_v51 }
 0x34e   : > { %3433 = vmatprep.subr.bf16.mxu0 %v3942_v21 }
 0x350   : > { %3345 = vmatpush3.bf16.msra.mxu1 %v3856_v2 }
 0x351   : > { %3346 = vmatprep.subr.bf16.mxu1 %v3857_v39  ;;  %3434 = vmatpush3.bf16.msra.mxu0 %v3874_v52 }
 0x352   : > { %3435 = vmatprep.subr.bf16.mxu0 %v3942_v21 }
 0x354   : > { %3347 = vmatpush3.bf16.msra.mxu1 %v3858_v48 }
 0x355   : > { %3348 = vmatprep.subr.bf16.mxu1 %v3859_v6  ;;  %3436 = vmatpush3.bf16.msra.mxu0 %v3875_v43 }
 0x356   : > { %3437 = vmatprep.subr.bf16.mxu0 %v3942_v21 }
 0x358   : > { %3349 = vmatpush3.bf16.msra.mxu1 %v3860_v40 }
 0x359   : > { %3403 = vmatprep.subr.bf16.mxu1 %v3942_v21  ;;  %3438 = vmatpush3.bf16.msra.mxu0 %v3876_v22 }
 0x35b   : > { %2731 = vmatmul.mubr.bf16.vlgmr.msra.gmra.mrb[20].mxu1 %v2324_v0 }
 0x35c   : > { %3419 = vmatprep.mubr.msk.bf16.mxu1 %vm3943_vm4, %v3942_v21  ;;  %3404 = vmatpush3.bf16.msra.mxu1 %v3861_v33 }
 0x35d   : > { %3405 = vmatprep.subr.bf16.mxu1 %v3942_v21 }
 0x360   : > { %3406 = vmatpush3.bf16.msra.mxu1 %v3862_v12 }
 0x361   : > { %3407 = vmatprep.subr.bf16.mxu1 %v3942_v21 }
 0x364   : > { %3408 = vmatpush3.bf16.msra.mxu1 %v3863_v14 }
 0x365   : > { %3409 = vmatprep.subr.bf16.mxu1 %v3942_v21 }
 0x368   : > { %3410 = vmatpush3.bf16.msra.mxu1 %v3864_v26 }
 0x369   : > { %3411 = vmatprep.subr.bf16.mxu1 %v3942_v21 }
 0x36c   : > { %3412 = vmatpush3.bf16.msra.mxu1 %v3865_v45 }
 0x36d   : > { %3413 = vmatprep.subr.bf16.mxu1 %v3942_v21 }
 0x370   : > { %3414 = vmatpush3.bf16.msra.mxu1 %v3866_v42 }
 0x371   : > { %3415 = vmatprep.subr.bf16.mxu1 %v3942_v21 }
 0x374   : > { %3416 = vmatpush3.bf16.msra.mxu1 %v3867_v61 }
 0x375   : > { %3417 = vmatprep.subr.bf16.mxu1 %v3942_v21  ;;  %v3298_v21 = vld [vmem:[%s5047_s10] ss:$0 sm:$0xff] }
 0x378   : > { %3418 = vmatpush3.bf16.msra.mxu1 %v3868_v4 }
 0x40d   : > { %v2772_v53 = vpop.f32.mrb[32].mxu0 }
 0x40e   : > { %v3328_v54 = vpop.f32.mrb[16].mxu1  ;;  %v3401_v58 = vpop.f32.mrb[33].mxu0 }
 0x40f   : > { %v3329_v44 = vpop.f32.mrb[17].mxu1  ;;  %v2775_v59 = vpop.f32.mrb[34].mxu0 }
 0x410   : > { %v3330_v1 = vadd.f32 %v3329_v44, %v3328_v54  ;;  %v3331_v5 = vpop.f32.mrb[18].mxu1  ;;  %v3402_v29 = vpop.f32.mrb[35].mxu0 }
 0x411   : > { %v3332_v8 = vpop.f32.mrb[19].mxu1 }
 0x412   : > { %v2693_v57 = vadd.f32 %v3330_v1, %v3248_v9 }
 0x42e   : > { %v3350_v38 = vpop.f32.mrb[20].mxu1 }
 0x42f   : > { %v3351_v31 = vpop.f32.mrb[21].mxu1 }
 0x430   : > { %v3352_v20 = vadd.f32 %v3351_v31, %v3350_v38  ;;  %v3353_v46 = vpop.f32.mrb[22].mxu1 }
 0x431   : > { %v3354_v10 = vpop.f32.mrb[23].mxu1 }
 0x432   : > { %v2733_v11 = vadd.f32 %v3352_v20, %v2693_v57 }
 0x434   : > { %v2773_v13 = vadd.f32 %v2772_v53, %v2733_v11 }
 0x436   : > { %v2778_v15 = vmax.f32 %v2773_v13, 0.0 }
 0x438   : > { %v2779_v16 = vpack.c.bf16 %v2778_v15, %v2778_v15 }
 0x43a   : > { %3420 = vmatmul.mubr.bf16.vlgmr.msra.gmra.mrb[24].mxu1 %v2779_v16 }
 0x50d   : > { %v2885_v23 = vpop.f32.mrb[24].mxu1 }
 0x50e   : > { %v2886_v32 = vadd.f32 %v3289_v47, %v2885_v23  ;;  %v3421_v24 = vpop.f32.mrb[25].mxu1 }
 0x50f   : > { %v2888_v56 = vpop.f32.mrb[26].mxu1 }
 0x510   : > { %v2891_v25 = vmax.f32 %v2886_v32, 0.0  ;;  %v3422_v17 = vpop.f32.mrb[27].mxu1 }
 0x512   : > { %v2892_v27 = vpack.c.bf16 %v2891_v25, %v2891_v25 }
 0x514   : > { %3440 = vmatmul.mubr.bf16.vlgmr.msra.gmra.mrb[36].mxu0 %v2892_v27 }
 0x5e7   : > { %v2998_v28 = vpop.f32.mrb[36].mxu0 }
 0x5e8   : > { %v2999_v60 = vadd.f32 %v3298_v21, %v2998_v28  ;;  %v3441_v49 = vpop.f32.mrb[37].mxu0 }
 0x5e9   : > { %v3001_v18 = vpop.f32.mrb[38].mxu0 }
 0x5ea   : > { %3004 = vst [vmem:[%s382_s22] sm:$0xf] %v2999_v60  ;;  %v3442_v63 = vpop.f32.mrb[39].mxu0 }
 0x5eb   : > { %3890 = shalt.err (!%p3887_p3)
}
 0x5ec   : > { %s3891_s12 = scalar_lea.hbm %s4995_s26, 64  ;;  %s3895_s29 = scalar_lea.hbm %s5048_s11, 128 }
 0x5ed   : > { %p3892_p4 = scmp.ne.s32.totalorder %s4995_s26, %s3891_s12  ;;  %p3896_p9 = scmp.lt.u32.totalorder %s4995_s26, %s5048_s11 }
 0x5ee   : > { %p3897_p10 = scmp.lt.u32.totalorder %s3895_s29, %s3891_s12  ;;  %p3899_p12 = scmp.lt.u32.totalorder %s3891_s12, %s4995_s26 }
 0x5ef   : > { %p3893_p7 = pnand %p3892_p4, %p4043_p5 }
 0x5f0   : > { %p3898_p11 = por %p3897_p10, %p3896_p9 }
 0x5f1   : > { %p3894_p8 = pneg %p3893_p7 }
 0x5f2   : > { %p3900_p13 = por %p3899_p12, %p3898_p11 }
 0x5f4   : > { %p3901_p0 = pnand %p3900_p13, %p3894_p8 }
 0x5f6   : > { %3904 = shalt.err (!%p3901_p0)
}
 0x5f7   : > { %3539 = dma.vmem_to_hbm [thread:$0]  (%p4043_p5), %s4997_s24, 64, %s4995_s26, %s3006_s30  }
 0x5f8 PF: > { %p3545_p1 = scmp.ge.s32.totalorder %s3939_s20, 2  ;;  %s3031_s21 = sand.u32 1, %s3927_s17  }
 0x5f9   : > { %s3032_s14 = scalar_lea.sflag [#allocation7], %s3031_s21 }
 0x5fa   : > { %p3542_p2 = pnand %p3545_p1, %p4047_p6 }
 0x5fc   : > { %3922 = dma.done.wait (!%p3542_p2), %s3032_s14, 64  }
 0x5fd   : > { %3924 = vsyncadd (!%p3542_p2), %s3032_s14, 4294967232  ;;  %s5052_s15 = sld [smem:[#allocation9_spill]]  ;;  %p21_p3 = scmp.ge.s32.totalorder %s4030_s23, 4  }
 0x5fe   : > { %s5053_s17 = smov %s3931_s18  ;;  %s5054_s18 = smov %s3935_s19 }
 0x5ff   : > { %s5056_s20 = smov %s4030_s23  ;;  %23 = sbr.rel (!%p21_p3) target bundleno = 3 (0x3), region = 125 }
 0x603   : > { %s5055_s19 = smov %s5052_s15 }
 0x606   :  { %3037 = vsyncpa [#allocation7], 1 }
 0x607   :  { %3039 = vsyncpa [#allocation7 + $0x1], 1 }

</bundles_post_ra>
